<compile_context>
chip_gen: v6e
topology: v6e:2x2x1
jax: 0.10.0
libtpu: 0.0.40
codegen_flags: <defaults>
</compile_context>

<pallas_src>
import functools

import numpy as np
import jax
import jax.numpy as jnp
from jax.experimental import pallas as pl
from jax.experimental.pallas import tpu as pltpu


# --------------------------------------------------------------------------
# Packed-parameter slab layout (shared by wrapper packer and kernel reader).
# Each layer's params live in one f32 [rows, cmax] slab; every piece is a
# row-block starting at column 0 (static, sublane-aligned slices in-kernel).
# --------------------------------------------------------------------------
def _round8(x):
    return (x + 7) & ~7


def _build_layout(widths, hidden, c_out):
    """widths: channel-block widths whose concat is the layer in_channels."""
    entries = []
    for k, c in enumerate(widths):
        entries.append((("w1a", k), c, hidden))
    for k, c in enumerate(widths):
        entries.append((("w1b", k), c, hidden))
    entries.append(("b1", 1, hidden))
    for k, c in enumerate(widths):
        entries.append((("w2", k), hidden, c))
    for k, c in enumerate(widths):
        entries.append((("b2", k), 1, c))
    for k, c in enumerate(widths):
        entries.append((("wl2", k), c, c_out))
    entries.append(("bl2", 1, c_out))
    for k, c in enumerate(widths):
        entries.append((("wl1", k), c, c_out))
    entries.append(("bl1", 1, c_out))

    layout, r, cmax = {}, 0, 0
    for key, nr, nc in entries:
        layout[key] = (r, nr, nc)
        r = _round8(r + nr)          # keep every piece sublane-aligned
        cmax = max(cmax, nc)
    return layout, r, cmax


def _pack_layer_slab(p, widths, c_out_pad):
    """Pack one _MPD_in layer's params into a single f32 slab (wrapper side)."""
    hidden = p["w1a"].shape[1]
    layout, rows, cmax = _build_layout(widths, hidden, c_out_pad)
    splits = [int(s) for s in np.cumsum(widths)[:-1]]

    pieces = {}
    for k, w in enumerate(jnp.split(p["w1a"], splits, axis=0)):
        pieces[("w1a", k)] = w
    for k, w in enumerate(jnp.split(p["w1b"], splits, axis=0)):
        pieces[("w1b", k)] = w
    pieces["b1"] = p["b1"]
    for k, w in enumerate(jnp.split(p["w2"], splits, axis=1)):
        pieces[("w2", k)] = w
    for k, w in enumerate(jnp.split(p["b2"], splits, axis=1)):
        pieces[("b2", k)] = w
    for k, w in enumerate(jnp.split(p["wl2"], splits, axis=0)):
        pieces[("wl2", k)] = w
    pieces["bl2"] = p["bl2"]
    for k, w in enumerate(jnp.split(p["wl1"], splits, axis=0)):
        pieces[("wl1", k)] = w
    pieces["bl1"] = p["bl1"]

    slab = jnp.zeros((rows, cmax), jnp.float32)
    for key, val in pieces.items():
        r0, nr, _ = layout[key]
        v = val.astype(jnp.float32)
        slab = slab.at[r0:r0 + nr, :v.shape[1]].set(v)   # zero lane padding
    return slab, layout


def _rd(slab_ref, layout, key):
    r0, nr, nc = layout[key]
    return slab_ref[r0:r0 + nr, :nc]


# --------------------------------------------------------------------------
# In-kernel compute for one _MPD_in layer.  The layer input is a list of
# channel blocks whose concatenation (along channels) is the true input; all
# weights are stored pre-split per block in the slab, so no concat is needed.
# --------------------------------------------------------------------------
def _layer(gi, gj, sc, x_blocks, slab_ref, layout, apply_relu):
    f32 = jnp.float32
    dot = lambda a, b: jnp.dot(a, b, preferred_element_type=f32)
    nb = len(x_blocks)

    # gather node features onto edges (MXU):  x_i = gi @ x,  x_j = gj @ x
    xi = [dot(gi, xb) for xb in x_blocks]
    xj = [dot(gj, xb) for xb in x_blocks]

    # mlp[0]: cat([x_i, x_j], 1) @ W1 + b1  (bias broadcast once), then ReLU
    h = _rd(slab_ref, layout, "b1")
    for k in range(nb):
        h = h + dot(xi[k], _rd(slab_ref, layout, ("w1a", k)))
        h = h + dot(xj[k], _rd(slab_ref, layout, ("w1b", k)))
    h = jnp.maximum(h, 0.0)

    # mlp[2] -> gate by (x_i - x_j) -> lin_2, per channel block
    msg = _rd(slab_ref, layout, "bl2")
    for k in range(nb):
        m_k = dot(h, _rd(slab_ref, layout, ("w2", k))) + _rd(slab_ref, layout, ("b2", k))
        msg = msg + dot(m_k * (xi[k] - xj[k]), _rd(slab_ref, layout, ("wl2", k)))

    # aggr='add': scatter-add messages onto target nodes.  sc is [N, E] so the
    # contraction is over the LHS last dim (standard MXU path, no transpose).
    agg = dot(sc, msg)

    # out = aggregate + lin_1(x)
    out = agg + _rd(slab_ref, layout, "bl1")
    for k in range(nb):
        out = out + dot(x_blocks[k], _rd(slab_ref, layout, ("wl1", k)))
    if apply_relu:
        out = jnp.maximum(out, 0.0)
    return out


def _fused_kernel(layouts, relus, n_nodes,
                  edges_r_ref, edges_c_ref, convs_ref, feats_ref,
                  slab_c_ref, slab_1_ref, slab_2_ref, slab_3_ref, out_ref):
    e = edges_c_ref.shape[0]
    n = n_nodes
    one = jnp.float32(1.0)
    zero = jnp.float32(0.0)

    # Build the 0/1 gather / scatter matrices IN-KERNEL from the edge indices
    # (no O(E*N) HBM inputs, no astype of HBM-sized arrays).
    src_col = edges_c_ref[:, 0:1]            # [E, 1]  source j
    dst_col = edges_c_ref[:, 1:2]            # [E, 1]  target i (aggregation idx)
    dst_row = edges_r_ref[1:2, :]            # [1, E]
    iota_en = jax.lax.broadcasted_iota(jnp.int32, (e, n), 1)
    iota_ne = jax.lax.broadcasted_iota(jnp.int32, (n, e), 0)
    gi = jnp.where(iota_en == dst_col, one, zero)    # [E, N] gather x_i
    gj = jnp.where(iota_en == src_col, one, zero)    # [E, N] gather x_j
    sc = jnp.where(iota_ne == dst_row, one, zero)    # [N, E] scatter-add

    convs = convs_ref[...]
    feats = feats_ref[...]

    preconv = _layer(gi, gj, sc, [convs], slab_c_ref, layouts[0], relus[0])
    # torch.concat((features, preconv), 1) is folded into layer_1's split weights
    x = _layer(gi, gj, sc, [feats, preconv], slab_1_ref, layouts[1], relus[1])
    x = _layer(gi, gj, sc, [x], slab_2_ref, layouts[2], relus[2])
    out = _layer(gi, gj, sc, [x], slab_3_ref, layouts[3], relus[3])
    out_ref[...] = out                       # (N, 128-padded) lane-dense store


# --------------------------------------------------------------------------
# Wrapper: slab packing + a single pallas_call (8 inputs total).
# --------------------------------------------------------------------------
@jax.jit
def msg_model_diff(params, convs, features, edges, weights):
    # `weights` (edge_attr) is accepted but unused, exactly as in the reference
    # module's message() which never touches edge_attr.
    del weights
    n = convs.shape[0]

    c_conv = convs.shape[1]
    c_feat = features.shape[1]
    c_pre = params["layer_conv"]["wl1"].shape[1]
    c_1 = params["layer_1"]["wl1"].shape[1]
    c_2 = params["layer_2"]["wl1"].shape[1]
    c_out = params["layer_3"]["wl1"].shape[1]
    c_out_pad = -(-c_out // 128) * 128       # lane-dense output (>=128 lanes)

    layer_cfg = (
        ("layer_conv", (c_conv,), c_pre),
        ("layer_1", (c_feat, c_pre), c_1),
        ("layer_2", (c_1,), c_2),
        ("layer_3", (c_2,), c_out_pad),
    )
    slabs, layouts = [], []
    for name, widths, opad in layer_cfg:
        slab, layout = _pack_layer_slab(params[name], list(widths), opad)
        slabs.append(slab)
        layouts.append(layout)

    edges_r = edges.astype(jnp.int32)        # [2, E]  (row 0: src j, row 1: dst i)
    edges_c = edges_r.T                      # [E, 2]

    relus = (False, True, True, False)
    kernel = functools.partial(_fused_kernel, tuple(layouts), relus, n)
    vmem = pl.BlockSpec(memory_space=pltpu.MemorySpace.VMEM)
    out = pl.pallas_call(
        kernel,
        out_shape=jax.ShapeDtypeStruct((n, c_out_pad), jnp.float32),
        in_specs=[vmem] * (4 + len(slabs)),
        out_specs=vmem,
    )(edges_r, edges_c, convs, features, *slabs)
    return out[:, :c_out]


# --------------------------------------------------------------------------
# Pure-JAX reference (for correctness check only)
# --------------------------------------------------------------------------
def _mpd_ref(x, edges, p, apply_relu=False):
    src, dst = edges[0], edges[1]
    x_i, x_j = x[dst], x[src]
    tmp = jnp.concatenate([x_i, x_j], axis=1)
    w1 = jnp.concatenate([p["w1a"], p["w1b"]], axis=0)
    h = jnp.maximum(tmp @ w1 + p["b1"], 0.0)
    m = (h @ p["w2"] + p["b2"]) * (x_i - x_j)
    msg = m @ p["wl2"] + p["bl2"]
    agg = jax.ops.segment_sum(msg, dst, num_segments=x.shape[0])
    out = agg + x @ p["wl1"] + p["bl1"]
    return jnp.maximum(out, 0.0) if apply_relu else out


def msg_model_diff_ref(params, convs, features, edges):
    preconv = _mpd_ref(convs, edges, params["layer_conv"])
    x = jnp.concatenate([features, preconv], axis=1)
    x = _mpd_ref(x, edges, params["layer_1"], apply_relu=True)
    x = _mpd_ref(x, edges, params["layer_2"], apply_relu=True)
    x = _mpd_ref(x, edges, params["layer_3"])
    return x


# --------------------------------------------------------------------------
# Deterministic parameter init (mirrors torch.nn.Linear default init)
# --------------------------------------------------------------------------
def _init_linear(key, in_f, out_f):
    k1, k2 = jax.random.split(key)
    bound = 1.0 / float(np.sqrt(in_f))
    w = jax.random.uniform(k1, (out_f, in_f), jnp.float32, -bound, bound)
    b = jax.random.uniform(k2, (out_f,), jnp.float32, -bound, bound)
    return w, b


def init_mpd_params(key, c_in, c_out, mm):
    ks = jax.random.split(key, 4)
    w_lin1, b_lin1 = _init_linear(ks[0], c_in, c_out)
    w_lin2, b_lin2 = _init_linear(ks[1], c_in, c_out)
    w_m0, b_m0 = _init_linear(ks[2], 2 * c_in, 2 * c_in * mm)
    w_m2, b_m2 = _init_linear(ks[3], 2 * c_in * mm, c_in)
    w1t = w_m0.T                          # [2*c_in, 2*c_in*mm]
    return dict(
        w1a=w1t[:c_in], w1b=w1t[c_in:], b1=b_m0[None, :],
        w2=w_m2.T, b2=b_m2[None, :],
        wl2=w_lin2.T, bl2=b_lin2[None, :],
        wl1=w_lin1.T, bl1=b_lin1[None, :],
    )


# --------------------------------------------------------------------------
if __name__ == "__main__":
    key = jax.random.PRNGKey(0)
    N, E = 8, 16
    num_in, num_conv, num_conv_channels = 8, 4, 6
    num_channels = (16, 12)
    num_out = 4
    mm = 2  # message_multiplier

    k_conv, k1, k2, k3, kc, kf, ke, kw = jax.random.split(key, 8)
    params = dict(
        layer_conv=init_mpd_params(k_conv, num_conv, num_conv_channels, mm),
        layer_1=init_mpd_params(
            k1, num_in - num_conv + num_conv_channels, num_channels[0], mm),
        layer_2=init_mpd_params(k2, num_channels[0], num_channels[1], mm),
        layer_3=init_mpd_params(k3, num_channels[1], num_out, mm),
    )

    convs = jax.random.normal(kc, (N, num_conv), jnp.float32)
    features = jax.random.normal(kf, (N, num_in - num_conv), jnp.float32)
    edges = jax.random.randint(ke, (2, E), 0, N, dtype=jnp.int32)
    weights = jax.random.normal(kw, (E, 1), jnp.float32)  # unused by message()

    out = msg_model_diff(params, convs, features, edges, weights)
    out = jax.block_until_ready(out)

    ref = msg_model_diff_ref(params, convs, features, edges)
    assert out.shape == (N, num_out)
    assert np.allclose(np.asarray(out), np.asarray(ref), atol=1e-3, rtol=1e-3)
    print("KERNEL_OK")
</pallas_src>

<mosaic_0001>
module attributes {stable_mosaic.version = 11 : i64} {
  func.func @_fused_kernel(%arg0: memref<2x16xi32, #tpu.memory_space<vmem>>, %arg1: memref<16x2xi32, #tpu.memory_space<vmem>>, %arg2: memref<8x4xf32, #tpu.memory_space<vmem>>, %arg3: memref<8x4xf32, #tpu.memory_space<vmem>>, %arg4: memref<80x16xf32, #tpu.memory_space<vmem>>, %arg5: memref<184x40xf32, #tpu.memory_space<vmem>>, %arg6: memref<160x64xf32, #tpu.memory_space<vmem>>, %arg7: memref<144x128xf32, #tpu.memory_space<vmem>>, %arg8: memref<8x128xf32, #tpu.memory_space<vmem>>) attributes {dimension_semantics = [], scalar_prefetch = 0 : i64, scratch_operands = 0 : i64, tpu.core_type = #tpu.core_type<tc>} {
    %c0 = arith.constant 0 : index
    %c0_0 = arith.constant 0 : index
    %0 = vector.load %arg1[%c0, %c0_0] : memref<16x2xi32, #tpu.memory_space<vmem>>, vector<16x1xi32>
    %c0_1 = arith.constant 0 : index
    %c1 = arith.constant 1 : index
    %1 = vector.load %arg1[%c0_1, %c1] : memref<16x2xi32, #tpu.memory_space<vmem>>, vector<16x1xi32>
    %c1_2 = arith.constant 1 : index
    %c0_3 = arith.constant 0 : index
    %2 = vector.load %arg0[%c1_2, %c0_3] : memref<2x16xi32, #tpu.memory_space<vmem>>, vector<1x16xi32>
    %3 = tpu.iota {dimensions = array<i32: 1>} : vector<16x8xi32>
    %4 = tpu.iota {dimensions = array<i32: 0>} : vector<8x16xi32>
    %5 = vector.broadcast %1 : vector<16x1xi32> to vector<16x8xi32>
    %6 = arith.cmpi eq, %3, %5 : vector<16x8xi32>
    %cst = arith.constant 1.000000e+00 : f32
    %cst_4 = arith.constant 0.000000e+00 : f32
    %7 = vector.broadcast %cst : f32 to vector<16x8xf32>
    %8 = vector.broadcast %cst_4 : f32 to vector<16x8xf32>
    %9 = arith.select %6, %7, %8 : vector<16x8xi1>, vector<16x8xf32>
    %10 = vector.broadcast %0 : vector<16x1xi32> to vector<16x8xi32>
    %11 = arith.cmpi eq, %3, %10 : vector<16x8xi32>
    %cst_5 = arith.constant 1.000000e+00 : f32
    %cst_6 = arith.constant 0.000000e+00 : f32
    %12 = vector.broadcast %cst_5 : f32 to vector<16x8xf32>
    %13 = vector.broadcast %cst_6 : f32 to vector<16x8xf32>
    %14 = arith.select %11, %12, %13 : vector<16x8xi1>, vector<16x8xf32>
    %15 = vector.broadcast %2 : vector<1x16xi32> to vector<8x16xi32>
    %16 = arith.cmpi eq, %4, %15 : vector<8x16xi32>
    %cst_7 = arith.constant 1.000000e+00 : f32
    %cst_8 = arith.constant 0.000000e+00 : f32
    %17 = vector.broadcast %cst_7 : f32 to vector<8x16xf32>
    %18 = vector.broadcast %cst_8 : f32 to vector<8x16xf32>
    %19 = arith.select %16, %17, %18 : vector<8x16xi1>, vector<8x16xf32>
    %c0_9 = arith.constant 0 : index
    %c0_10 = arith.constant 0 : index
    %20 = vector.load %arg2[%c0_9, %c0_10] : memref<8x4xf32, #tpu.memory_space<vmem>>, vector<8x4xf32>
    %c0_11 = arith.constant 0 : index
    %c0_12 = arith.constant 0 : index
    %21 = vector.load %arg3[%c0_11, %c0_12] : memref<8x4xf32, #tpu.memory_space<vmem>>, vector<8x4xf32>
    %cst_13 = arith.constant dense<0.000000e+00> : vector<16x4xf32>
    %22 = tpu.matmul %9, %20, %cst_13 {dimension_numbers = #tpu.dot_dimension_numbers<[1], [0], [0], [1], [0, 0, 1, 1], [], []>} : vector<16x8xf32>, vector<8x4xf32>, vector<16x4xf32> -> vector<16x4xf32>
    %cst_14 = arith.constant dense<0.000000e+00> : vector<16x4xf32>
    %23 = tpu.matmul %14, %20, %cst_14 {dimension_numbers = #tpu.dot_dimension_numbers<[1], [0], [0], [1], [0, 0, 1, 1], [], []>} : vector<16x8xf32>, vector<8x4xf32>, vector<16x4xf32> -> vector<16x4xf32>
    %c16 = arith.constant 16 : index
    %c0_15 = arith.constant 0 : index
    %24 = vector.load %arg4[%c16, %c0_15] : memref<80x16xf32, #tpu.memory_space<vmem>>, vector<1x16xf32>
    %c0_16 = arith.constant 0 : index
    %c0_17 = arith.constant 0 : index
    %25 = vector.load %arg4[%c0_16, %c0_17] : memref<80x16xf32, #tpu.memory_space<vmem>>, vector<4x16xf32>
    %cst_18 = arith.constant dense<0.000000e+00> : vector<16x16xf32>
    %26 = tpu.matmul %22, %25, %cst_18 {dimension_numbers = #tpu.dot_dimension_numbers<[1], [0], [0], [1], [0, 0, 1, 1], [], []>} : vector<16x4xf32>, vector<4x16xf32>, vector<16x16xf32> -> vector<16x16xf32>
    %27 = vector.broadcast %24 : vector<1x16xf32> to vector<16x16xf32>
    %28 = arith.addf %27, %26 : vector<16x16xf32>
    %c8 = arith.constant 8 : index
    %c0_19 = arith.constant 0 : index
    %29 = vector.load %arg4[%c8, %c0_19] : memref<80x16xf32, #tpu.memory_space<vmem>>, vector<4x16xf32>
    %cst_20 = arith.constant dense<0.000000e+00> : vector<16x16xf32>
    %30 = tpu.matmul %23, %29, %cst_20 {dimension_numbers = #tpu.dot_dimension_numbers<[1], [0], [0], [1], [0, 0, 1, 1], [], []>} : vector<16x4xf32>, vector<4x16xf32>, vector<16x16xf32> -> vector<16x16xf32>
    %31 = arith.addf %28, %30 : vector<16x16xf32>
    %cst_21 = arith.constant 0.000000e+00 : f32
    %32 = vector.broadcast %cst_21 : f32 to vector<16x16xf32>
    %33 = arith.maximumf %31, %32 : vector<16x16xf32>
    %c56 = arith.constant 56 : index
    %c0_22 = arith.constant 0 : index
    %34 = vector.load %arg4[%c56, %c0_22] : memref<80x16xf32, #tpu.memory_space<vmem>>, vector<1x6xf32>
    %c24 = arith.constant 24 : index
    %c0_23 = arith.constant 0 : index
    %35 = vector.load %arg4[%c24, %c0_23] : memref<80x16xf32, #tpu.memory_space<vmem>>, vector<16x4xf32>
    %cst_24 = arith.constant dense<0.000000e+00> : vector<16x4xf32>
    %36 = tpu.matmul %33, %35, %cst_24 {dimension_numbers = #tpu.dot_dimension_numbers<[1], [0], [0], [1], [0, 0, 1, 1], [], []>} : vector<16x16xf32>, vector<16x4xf32>, vector<16x4xf32> -> vector<16x4xf32>
    %c40 = arith.constant 40 : index
    %c0_25 = arith.constant 0 : index
    %37 = vector.load %arg4[%c40, %c0_25] : memref<80x16xf32, #tpu.memory_space<vmem>>, vector<1x4xf32>
    %38 = vector.broadcast %37 : vector<1x4xf32> to vector<16x4xf32>
    %39 = arith.addf %36, %38 : vector<16x4xf32>
    %40 = arith.subf %22, %23 : vector<16x4xf32>
    %41 = arith.mulf %39, %40 : vector<16x4xf32>
    %c48 = arith.constant 48 : index
    %c0_26 = arith.constant 0 : index
    %42 = vector.load %arg4[%c48, %c0_26] : memref<80x16xf32, #tpu.memory_space<vmem>>, vector<4x6xf32>
    %cst_27 = arith.constant dense<0.000000e+00> : vector<16x6xf32>
    %43 = tpu.matmul %41, %42, %cst_27 {dimension_numbers = #tpu.dot_dimension_numbers<[1], [0], [0], [1], [0, 0, 1, 1], [], []>} : vector<16x4xf32>, vector<4x6xf32>, vector<16x6xf32> -> vector<16x6xf32>
    %44 = vector.broadcast %34 : vector<1x6xf32> to vector<16x6xf32>
    %45 = arith.addf %44, %43 : vector<16x6xf32>
    %cst_28 = arith.constant dense<0.000000e+00> : vector<8x6xf32>
    %46 = tpu.matmul %19, %45, %cst_28 {dimension_numbers = #tpu.dot_dimension_numbers<[1], [0], [0], [1], [0, 0, 1, 1], [], []>} : vector<8x16xf32>, vector<16x6xf32>, vector<8x6xf32> -> vector<8x6xf32>
    %c72 = arith.constant 72 : index
    %c0_29 = arith.constant 0 : index
    %47 = vector.load %arg4[%c72, %c0_29] : memref<80x16xf32, #tpu.memory_space<vmem>>, vector<1x6xf32>
    %48 = vector.broadcast %47 : vector<1x6xf32> to vector<8x6xf32>
    %49 = arith.addf %46, %48 : vector<8x6xf32>
    %c64 = arith.constant 64 : index
    %c0_30 = arith.constant 0 : index
    %50 = vector.load %arg4[%c64, %c0_30] : memref<80x16xf32, #tpu.memory_space<vmem>>, vector<4x6xf32>
    %cst_31 = arith.constant dense<0.000000e+00> : vector<8x6xf32>
    %51 = tpu.matmul %20, %50, %cst_31 {dimension_numbers = #tpu.dot_dimension_numbers<[1], [0], [0], [1], [0, 0, 1, 1], [], []>} : vector<8x4xf32>, vector<4x6xf32>, vector<8x6xf32> -> vector<8x6xf32>
    %52 = arith.addf %49, %51 : vector<8x6xf32>
    %cst_32 = arith.constant dense<0.000000e+00> : vector<16x4xf32>
    %53 = tpu.matmul %9, %21, %cst_32 {dimension_numbers = #tpu.dot_dimension_numbers<[1], [0], [0], [1], [0, 0, 1, 1], [], []>} : vector<16x8xf32>, vector<8x4xf32>, vector<16x4xf32> -> vector<16x4xf32>
    %cst_33 = arith.constant dense<0.000000e+00> : vector<16x6xf32>
    %54 = tpu.matmul %9, %52, %cst_33 {dimension_numbers = #tpu.dot_dimension_numbers<[1], [0], [0], [1], [0, 0, 1, 1], [], []>} : vector<16x8xf32>, vector<8x6xf32>, vector<16x6xf32> -> vector<16x6xf32>
    %cst_34 = arith.constant dense<0.000000e+00> : vector<16x4xf32>
    %55 = tpu.matmul %14, %21, %cst_34 {dimension_numbers = #tpu.dot_dimension_numbers<[1], [0], [0], [1], [0, 0, 1, 1], [], []>} : vector<16x8xf32>, vector<8x4xf32>, vector<16x4xf32> -> vector<16x4xf32>
    %cst_35 = arith.constant dense<0.000000e+00> : vector<16x6xf32>
    %56 = tpu.matmul %14, %52, %cst_35 {dimension_numbers = #tpu.dot_dimension_numbers<[1], [0], [0], [1], [0, 0, 1, 1], [], []>} : vector<16x8xf32>, vector<8x6xf32>, vector<16x6xf32> -> vector<16x6xf32>
    %c32 = arith.constant 32 : index
    %c0_36 = arith.constant 0 : index
    %57 = vector.load %arg5[%c32, %c0_36] : memref<184x40xf32, #tpu.memory_space<vmem>>, vector<1x40xf32>
    %c0_37 = arith.constant 0 : index
    %c0_38 = arith.constant 0 : index
    %58 = vector.load %arg5[%c0_37, %c0_38] : memref<184x40xf32, #tpu.memory_space<vmem>>, vector<4x40xf32>
    %cst_39 = arith.constant dense<0.000000e+00> : vector<16x40xf32>
    %59 = tpu.matmul %53, %58, %cst_39 {dimension_numbers = #tpu.dot_dimension_numbers<[1], [0], [0], [1], [0, 0, 1, 1], [], []>} : vector<16x4xf32>, vector<4x40xf32>, vector<16x40xf32> -> vector<16x40xf32>
    %60 = vector.broadcast %57 : vector<1x40xf32> to vector<16x40xf32>
    %61 = arith.addf %60, %59 : vector<16x40xf32>
    %c16_40 = arith.constant 16 : index
    %c0_41 = arith.constant 0 : index
    %62 = vector.load %arg5[%c16_40, %c0_41] : memref<184x40xf32, #tpu.memory_space<vmem>>, vector<4x40xf32>
    %cst_42 = arith.constant dense<0.000000e+00> : vector<16x40xf32>
    %63 = tpu.matmul %55, %62, %cst_42 {dimension_numbers = #tpu.dot_dimension_numbers<[1], [0], [0], [1], [0, 0, 1, 1], [], []>} : vector<16x4xf32>, vector<4x40xf32>, vector<16x40xf32> -> vector<16x40xf32>
    %64 = arith.addf %61, %63 : vector<16x40xf32>
    %c8_43 = arith.constant 8 : index
    %c0_44 = arith.constant 0 : index
    %65 = vector.load %arg5[%c8_43, %c0_44] : memref<184x40xf32, #tpu.memory_space<vmem>>, vector<6x40xf32>
    %cst_45 = arith.constant dense<0.000000e+00> : vector<16x40xf32>
    %66 = tpu.matmul %54, %65, %cst_45 {dimension_numbers = #tpu.dot_dimension_numbers<[1], [0], [0], [1], [0, 0, 1, 1], [], []>} : vector<16x6xf32>, vector<6x40xf32>, vector<16x40xf32> -> vector<16x40xf32>
    %67 = arith.addf %64, %66 : vector<16x40xf32>
    %c24_46 = arith.constant 24 : index
    %c0_47 = arith.constant 0 : index
    %68 = vector.load %arg5[%c24_46, %c0_47] : memref<184x40xf32, #tpu.memory_space<vmem>>, vector<6x40xf32>
    %cst_48 = arith.constant dense<0.000000e+00> : vector<16x40xf32>
    %69 = tpu.matmul %56, %68, %cst_48 {dimension_numbers = #tpu.dot_dimension_numbers<[1], [0], [0], [1], [0, 0, 1, 1], [], []>} : vector<16x6xf32>, vector<6x40xf32>, vector<16x40xf32> -> vector<16x40xf32>
    %70 = arith.addf %67, %69 : vector<16x40xf32>
    %cst_49 = arith.constant 0.000000e+00 : f32
    %71 = vector.broadcast %cst_49 : f32 to vector<16x40xf32>
    %72 = arith.maximumf %70, %71 : vector<16x40xf32>
    %c152 = arith.constant 152 : index
    %c0_50 = arith.constant 0 : index
    %73 = vector.load %arg5[%c152, %c0_50] : memref<184x40xf32, #tpu.memory_space<vmem>>, vector<1x16xf32>
    %c40_51 = arith.constant 40 : index
    %c0_52 = arith.constant 0 : index
    %74 = vector.load %arg5[%c40_51, %c0_52] : memref<184x40xf32, #tpu.memory_space<vmem>>, vector<40x4xf32>
    %cst_53 = arith.constant dense<0.000000e+00> : vector<16x4xf32>
    %75 = tpu.matmul %72, %74, %cst_53 {dimension_numbers = #tpu.dot_dimension_numbers<[1], [0], [0], [1], [0, 0, 1, 1], [], []>} : vector<16x40xf32>, vector<40x4xf32>, vector<16x4xf32> -> vector<16x4xf32>
    %c120 = arith.constant 120 : index
    %c0_54 = arith.constant 0 : index
    %76 = vector.load %arg5[%c120, %c0_54] : memref<184x40xf32, #tpu.memory_space<vmem>>, vector<1x4xf32>
    %77 = vector.broadcast %76 : vector<1x4xf32> to vector<16x4xf32>
    %78 = arith.addf %75, %77 : vector<16x4xf32>
    %79 = arith.subf %53, %55 : vector<16x4xf32>
    %80 = arith.mulf %78, %79 : vector<16x4xf32>
    %c136 = arith.constant 136 : index
    %c0_55 = arith.constant 0 : index
    %81 = vector.load %arg5[%c136, %c0_55] : memref<184x40xf32, #tpu.memory_space<vmem>>, vector<4x16xf32>
    %cst_56 = arith.constant dense<0.000000e+00> : vector<16x16xf32>
    %82 = tpu.matmul %80, %81, %cst_56 {dimension_numbers = #tpu.dot_dimension_numbers<[1], [0], [0], [1], [0, 0, 1, 1], [], []>} : vector<16x4xf32>, vector<4x16xf32>, vector<16x16xf32> -> vector<16x16xf32>
    %83 = vector.broadcast %73 : vector<1x16xf32> to vector<16x16xf32>
    %84 = arith.addf %83, %82 : vector<16x16xf32>
    %c80 = arith.constant 80 : index
    %c0_57 = arith.constant 0 : index
    %85 = vector.load %arg5[%c80, %c0_57] : memref<184x40xf32, #tpu.memory_space<vmem>>, vector<40x6xf32>
    %cst_58 = arith.constant dense<0.000000e+00> : vector<16x6xf32>
    %86 = tpu.matmul %72, %85, %cst_58 {dimension_numbers = #tpu.dot_dimension_numbers<[1], [0], [0], [1], [0, 0, 1, 1], [], []>} : vector<16x40xf32>, vector<40x6xf32>, vector<16x6xf32> -> vector<16x6xf32>
    %c128 = arith.constant 128 : index
    %c0_59 = arith.constant 0 : index
    %87 = vector.load %arg5[%c128, %c0_59] : memref<184x40xf32, #tpu.memory_space<vmem>>, vector<1x6xf32>
    %88 = vector.broadcast %87 : vector<1x6xf32> to vector<16x6xf32>
    %89 = arith.addf %86, %88 : vector<16x6xf32>
    %90 = arith.subf %54, %56 : vector<16x6xf32>
    %91 = arith.mulf %89, %90 : vector<16x6xf32>
    %c144 = arith.constant 144 : index
    %c0_60 = arith.constant 0 : index
    %92 = vector.load %arg5[%c144, %c0_60] : memref<184x40xf32, #tpu.memory_space<vmem>>, vector<6x16xf32>
    %cst_61 = arith.constant dense<0.000000e+00> : vector<16x16xf32>
    %93 = tpu.matmul %91, %92, %cst_61 {dimension_numbers = #tpu.dot_dimension_numbers<[1], [0], [0], [1], [0, 0, 1, 1], [], []>} : vector<16x6xf32>, vector<6x16xf32>, vector<16x16xf32> -> vector<16x16xf32>
    %94 = arith.addf %84, %93 : vector<16x16xf32>
    %cst_62 = arith.constant dense<0.000000e+00> : vector<8x16xf32>
    %95 = tpu.matmul %19, %94, %cst_62 {dimension_numbers = #tpu.dot_dimension_numbers<[1], [0], [0], [1], [0, 0, 1, 1], [], []>} : vector<8x16xf32>, vector<16x16xf32>, vector<8x16xf32> -> vector<8x16xf32>
    %c176 = arith.constant 176 : index
    %c0_63 = arith.constant 0 : index
    %96 = vector.load %arg5[%c176, %c0_63] : memref<184x40xf32, #tpu.memory_space<vmem>>, vector<1x16xf32>
    %97 = vector.broadcast %96 : vector<1x16xf32> to vector<8x16xf32>
    %98 = arith.addf %95, %97 : vector<8x16xf32>
    %c160 = arith.constant 160 : index
    %c0_64 = arith.constant 0 : index
    %99 = vector.load %arg5[%c160, %c0_64] : memref<184x40xf32, #tpu.memory_space<vmem>>, vector<4x16xf32>
    %cst_65 = arith.constant dense<0.000000e+00> : vector<8x16xf32>
    %100 = tpu.matmul %21, %99, %cst_65 {dimension_numbers = #tpu.dot_dimension_numbers<[1], [0], [0], [1], [0, 0, 1, 1], [], []>} : vector<8x4xf32>, vector<4x16xf32>, vector<8x16xf32> -> vector<8x16xf32>
    %101 = arith.addf %98, %100 : vector<8x16xf32>
    %c168 = arith.constant 168 : index
    %c0_66 = arith.constant 0 : index
    %102 = vector.load %arg5[%c168, %c0_66] : memref<184x40xf32, #tpu.memory_space<vmem>>, vector<6x16xf32>
    %cst_67 = arith.constant dense<0.000000e+00> : vector<8x16xf32>
    %103 = tpu.matmul %52, %102, %cst_67 {dimension_numbers = #tpu.dot_dimension_numbers<[1], [0], [0], [1], [0, 0, 1, 1], [], []>} : vector<8x6xf32>, vector<6x16xf32>, vector<8x16xf32> -> vector<8x16xf32>
    %104 = arith.addf %101, %103 : vector<8x16xf32>
    %cst_68 = arith.constant 0.000000e+00 : f32
    %105 = vector.broadcast %cst_68 : f32 to vector<8x16xf32>
    %106 = arith.maximumf %104, %105 : vector<8x16xf32>
    %cst_69 = arith.constant dense<0.000000e+00> : vector<16x16xf32>
    %107 = tpu.matmul %9, %106, %cst_69 {dimension_numbers = #tpu.dot_dimension_numbers<[1], [0], [0], [1], [0, 0, 1, 1], [], []>} : vector<16x8xf32>, vector<8x16xf32>, vector<16x16xf32> -> vector<16x16xf32>
    %cst_70 = arith.constant dense<0.000000e+00> : vector<16x16xf32>
    %108 = tpu.matmul %14, %106, %cst_70 {dimension_numbers = #tpu.dot_dimension_numbers<[1], [0], [0], [1], [0, 0, 1, 1], [], []>} : vector<16x8xf32>, vector<8x16xf32>, vector<16x16xf32> -> vector<16x16xf32>
    %c32_71 = arith.constant 32 : index
    %c0_72 = arith.constant 0 : index
    %109 = vector.load %arg6[%c32_71, %c0_72] : memref<160x64xf32, #tpu.memory_space<vmem>>, vector<1x64xf32>
    %c0_73 = arith.constant 0 : index
    %c0_74 = arith.constant 0 : index
    %110 = vector.load %arg6[%c0_73, %c0_74] : memref<160x64xf32, #tpu.memory_space<vmem>>, vector<16x64xf32>
    %cst_75 = arith.constant dense<0.000000e+00> : vector<16x64xf32>
    %111 = tpu.matmul %107, %110, %cst_75 {dimension_numbers = #tpu.dot_dimension_numbers<[1], [0], [0], [1], [0, 0, 1, 1], [], []>} : vector<16x16xf32>, vector<16x64xf32>, vector<16x64xf32> -> vector<16x64xf32>
    %112 = vector.broadcast %109 : vector<1x64xf32> to vector<16x64xf32>
    %113 = arith.addf %112, %111 : vector<16x64xf32>
    %c16_76 = arith.constant 16 : index
    %c0_77 = arith.constant 0 : index
    %114 = vector.load %arg6[%c16_76, %c0_77] : memref<160x64xf32, #tpu.memory_space<vmem>>, vector<16x64xf32>
    %cst_78 = arith.constant dense<0.000000e+00> : vector<16x64xf32>
    %115 = tpu.matmul %108, %114, %cst_78 {dimension_numbers = #tpu.dot_dimension_numbers<[1], [0], [0], [1], [0, 0, 1, 1], [], []>} : vector<16x16xf32>, vector<16x64xf32>, vector<16x64xf32> -> vector<16x64xf32>
    %116 = arith.addf %113, %115 : vector<16x64xf32>
    %cst_79 = arith.constant 0.000000e+00 : f32
    %117 = vector.broadcast %cst_79 : f32 to vector<16x64xf32>
    %118 = arith.maximumf %116, %117 : vector<16x64xf32>
    %c128_80 = arith.constant 128 : index
    %c0_81 = arith.constant 0 : index
    %119 = vector.load %arg6[%c128_80, %c0_81] : memref<160x64xf32, #tpu.memory_space<vmem>>, vector<1x12xf32>
    %c40_82 = arith.constant 40 : index
    %c0_83 = arith.constant 0 : index
    %120 = vector.load %arg6[%c40_82, %c0_83] : memref<160x64xf32, #tpu.memory_space<vmem>>, vector<64x16xf32>
    %cst_84 = arith.constant dense<0.000000e+00> : vector<16x16xf32>
    %121 = tpu.matmul %118, %120, %cst_84 {dimension_numbers = #tpu.dot_dimension_numbers<[1], [0], [0], [1], [0, 0, 1, 1], [], []>} : vector<16x64xf32>, vector<64x16xf32>, vector<16x16xf32> -> vector<16x16xf32>
    %c104 = arith.constant 104 : index
    %c0_85 = arith.constant 0 : index
    %122 = vector.load %arg6[%c104, %c0_85] : memref<160x64xf32, #tpu.memory_space<vmem>>, vector<1x16xf32>
    %123 = vector.broadcast %122 : vector<1x16xf32> to vector<16x16xf32>
    %124 = arith.addf %121, %123 : vector<16x16xf32>
    %125 = arith.subf %107, %108 : vector<16x16xf32>
    %126 = arith.mulf %124, %125 : vector<16x16xf32>
    %c112 = arith.constant 112 : index
    %c0_86 = arith.constant 0 : index
    %127 = vector.load %arg6[%c112, %c0_86] : memref<160x64xf32, #tpu.memory_space<vmem>>, vector<16x12xf32>
    %cst_87 = arith.constant dense<0.000000e+00> : vector<16x12xf32>
    %128 = tpu.matmul %126, %127, %cst_87 {dimension_numbers = #tpu.dot_dimension_numbers<[1], [0], [0], [1], [0, 0, 1, 1], [], []>} : vector<16x16xf32>, vector<16x12xf32>, vector<16x12xf32> -> vector<16x12xf32>
    %129 = vector.broadcast %119 : vector<1x12xf32> to vector<16x12xf32>
    %130 = arith.addf %129, %128 : vector<16x12xf32>
    %cst_88 = arith.constant dense<0.000000e+00> : vector<8x12xf32>
    %131 = tpu.matmul %19, %130, %cst_88 {dimension_numbers = #tpu.dot_dimension_numbers<[1], [0], [0], [1], [0, 0, 1, 1], [], []>} : vector<8x16xf32>, vector<16x12xf32>, vector<8x12xf32> -> vector<8x12xf32>
    %c152_89 = arith.constant 152 : index
    %c0_90 = arith.constant 0 : index
    %132 = vector.load %arg6[%c152_89, %c0_90] : memref<160x64xf32, #tpu.memory_space<vmem>>, vector<1x12xf32>
    %133 = vector.broadcast %132 : vector<1x12xf32> to vector<8x12xf32>
    %134 = arith.addf %131, %133 : vector<8x12xf32>
    %c136_91 = arith.constant 136 : index
    %c0_92 = arith.constant 0 : index
    %135 = vector.load %arg6[%c136_91, %c0_92] : memref<160x64xf32, #tpu.memory_space<vmem>>, vector<16x12xf32>
    %cst_93 = arith.constant dense<0.000000e+00> : vector<8x12xf32>
    %136 = tpu.matmul %106, %135, %cst_93 {dimension_numbers = #tpu.dot_dimension_numbers<[1], [0], [0], [1], [0, 0, 1, 1], [], []>} : vector<8x16xf32>, vector<16x12xf32>, vector<8x12xf32> -> vector<8x12xf32>
    %137 = arith.addf %134, %136 : vector<8x12xf32>
    %cst_94 = arith.constant 0.000000e+00 : f32
    %138 = vector.broadcast %cst_94 : f32 to vector<8x12xf32>
    %139 = arith.maximumf %137, %138 : vector<8x12xf32>
    %cst_95 = arith.constant dense<0.000000e+00> : vector<16x12xf32>
    %140 = tpu.matmul %9, %139, %cst_95 {dimension_numbers = #tpu.dot_dimension_numbers<[1], [0], [0], [1], [0, 0, 1, 1], [], []>} : vector<16x8xf32>, vector<8x12xf32>, vector<16x12xf32> -> vector<16x12xf32>
    %cst_96 = arith.constant dense<0.000000e+00> : vector<16x12xf32>
    %141 = tpu.matmul %14, %139, %cst_96 {dimension_numbers = #tpu.dot_dimension_numbers<[1], [0], [0], [1], [0, 0, 1, 1], [], []>} : vector<16x8xf32>, vector<8x12xf32>, vector<16x12xf32> -> vector<16x12xf32>
    %c32_97 = arith.constant 32 : index
    %c0_98 = arith.constant 0 : index
    %142 = vector.load %arg7[%c32_97, %c0_98] : memref<144x128xf32, #tpu.memory_space<vmem>>, vector<1x48xf32>
    %c0_99 = arith.constant 0 : index
    %c0_100 = arith.constant 0 : index
    %143 = vector.load %arg7[%c0_99, %c0_100] : memref<144x128xf32, #tpu.memory_space<vmem>>, vector<12x48xf32>
    %cst_101 = arith.constant dense<0.000000e+00> : vector<16x48xf32>
    %144 = tpu.matmul %140, %143, %cst_101 {dimension_numbers = #tpu.dot_dimension_numbers<[1], [0], [0], [1], [0, 0, 1, 1], [], []>} : vector<16x12xf32>, vector<12x48xf32>, vector<16x48xf32> -> vector<16x48xf32>
    %145 = vector.broadcast %142 : vector<1x48xf32> to vector<16x48xf32>
    %146 = arith.addf %145, %144 : vector<16x48xf32>
    %c16_102 = arith.constant 16 : index
    %c0_103 = arith.constant 0 : index
    %147 = vector.load %arg7[%c16_102, %c0_103] : memref<144x128xf32, #tpu.memory_space<vmem>>, vector<12x48xf32>
    %cst_104 = arith.constant dense<0.000000e+00> : vector<16x48xf32>
    %148 = tpu.matmul %141, %147, %cst_104 {dimension_numbers = #tpu.dot_dimension_numbers<[1], [0], [0], [1], [0, 0, 1, 1], [], []>} : vector<16x12xf32>, vector<12x48xf32>, vector<16x48xf32> -> vector<16x48xf32>
    %149 = arith.addf %146, %148 : vector<16x48xf32>
    %cst_105 = arith.constant 0.000000e+00 : f32
    %150 = vector.broadcast %cst_105 : f32 to vector<16x48xf32>
    %151 = arith.maximumf %149, %150 : vector<16x48xf32>
    %c112_106 = arith.constant 112 : index
    %c0_107 = arith.constant 0 : index
    %152 = vector.load %arg7[%c112_106, %c0_107] : memref<144x128xf32, #tpu.memory_space<vmem>>, vector<1x128xf32>
    %c40_108 = arith.constant 40 : index
    %c0_109 = arith.constant 0 : index
    %153 = vector.load %arg7[%c40_108, %c0_109] : memref<144x128xf32, #tpu.memory_space<vmem>>, vector<48x12xf32>
    %cst_110 = arith.constant dense<0.000000e+00> : vector<16x12xf32>
    %154 = tpu.matmul %151, %153, %cst_110 {dimension_numbers = #tpu.dot_dimension_numbers<[1], [0], [0], [1], [0, 0, 1, 1], [], []>} : vector<16x48xf32>, vector<48x12xf32>, vector<16x12xf32> -> vector<16x12xf32>
    %c88 = arith.constant 88 : index
    %c0_111 = arith.constant 0 : index
    %155 = vector.load %arg7[%c88, %c0_111] : memref<144x128xf32, #tpu.memory_space<vmem>>, vector<1x12xf32>
    %156 = vector.broadcast %155 : vector<1x12xf32> to vector<16x12xf32>
    %157 = arith.addf %154, %156 : vector<16x12xf32>
    %158 = arith.subf %140, %141 : vector<16x12xf32>
    %159 = arith.mulf %157, %158 : vector<16x12xf32>
    %c96 = arith.constant 96 : index
    %c0_112 = arith.constant 0 : index
    %160 = vector.load %arg7[%c96, %c0_112] : memref<144x128xf32, #tpu.memory_space<vmem>>, vector<12x128xf32>
    %cst_113 = arith.constant dense<0.000000e+00> : vector<16x128xf32>
    %161 = tpu.matmul %159, %160, %cst_113 {dimension_numbers = #tpu.dot_dimension_numbers<[1], [0], [0], [1], [0, 0, 1, 1], [], []>} : vector<16x12xf32>, vector<12x128xf32>, vector<16x128xf32> -> vector<16x128xf32>
    %162 = vector.broadcast %152 : vector<1x128xf32> to vector<16x128xf32>
    %163 = arith.addf %162, %161 : vector<16x128xf32>
    %cst_114 = arith.constant dense<0.000000e+00> : vector<8x128xf32>
    %164 = tpu.matmul %19, %163, %cst_114 {dimension_numbers = #tpu.dot_dimension_numbers<[1], [0], [0], [1], [0, 0, 1, 1], [], []>} : vector<8x16xf32>, vector<16x128xf32>, vector<8x128xf32> -> vector<8x128xf32>
    %c136_115 = arith.constant 136 : index
    %c0_116 = arith.constant 0 : index
    %165 = vector.load %arg7[%c136_115, %c0_116] : memref<144x128xf32, #tpu.memory_space<vmem>>, vector<1x128xf32>
    %166 = vector.broadcast %165 : vector<1x128xf32> to vector<8x128xf32>
    %167 = arith.addf %164, %166 : vector<8x128xf32>
    %c120_117 = arith.constant 120 : index
    %c0_118 = arith.constant 0 : index
    %168 = vector.load %arg7[%c120_117, %c0_118] : memref<144x128xf32, #tpu.memory_space<vmem>>, vector<12x128xf32>
    %cst_119 = arith.constant dense<0.000000e+00> : vector<8x128xf32>
    %169 = tpu.matmul %139, %168, %cst_119 {dimension_numbers = #tpu.dot_dimension_numbers<[1], [0], [0], [1], [0, 0, 1, 1], [], []>} : vector<8x12xf32>, vector<12x128xf32>, vector<8x128xf32> -> vector<8x128xf32>
    %170 = arith.addf %167, %169 : vector<8x128xf32>
    %c0_120 = arith.constant 0 : index
    %c0_121 = arith.constant 0 : index
    %171 = vector.load %arg8[%c0_120, %c0_121] : memref<8x128xf32, #tpu.memory_space<vmem>>, vector<8x128xf32>
    tpu.vector_store %arg8[%c0_120, %c0_121], %170 {strides = array<i32>} : memref<8x128xf32, #tpu.memory_space<vmem>>, vector<8x128xf32>,
    return
  }
}

</mosaic_0001>

<bundles_post_ra>
// kernel: split.13
= control target key start
LH: loop header
LB: loop body
LE: loop exit
PB: predicated region body
PF: predicated region fallthrough
CT: control target
= control target key end

     0   :  { %vm5_vm0 = vcmask 1043456   ;;  %s29_s0 = inlined_call_operand.vmem [shape: f32[10,40], index: 0, kind: input, shape index: {}]   ;;  %s30_s1 = inlined_call_operand.vmem [shape: f32[6,40], index: 1, kind: output, shape index: {}]  }
   0x1   :  { %v2_v0 = vld [vmem:[%s29_s0] sm:$0xff]  ;;  %v9_v1 = vld [vmem:[%s29_s0 + $0x8] sm:$0xff] }
   0x2   :  { %v6_v2 = vsel %vm5_vm0, %v9_v1, %v2_v0 }
   0x3   :  { %v7_v3 = vrot.slane %v6_v2, 4 }
   0x5   :  { %8 = vst [vmem:[%s30_s1] sm:$0xff] %v7_v3 }

// kernel: split.17
= control target key start
LH: loop header
LB: loop body
LE: loop exit
PB: predicated region body
PF: predicated region fallthrough
CT: control target
= control target key end

     0   :  { %vm5_vm0 = vcmask 1043456   ;;  %s29_s0 = inlined_call_operand.vmem [shape: f32[40,10], index: 0, kind: input, shape index: {}]   ;;  %s30_s1 = inlined_call_operand.vmem [shape: f32[40,6], index: 1, kind: output, shape index: {}]  }
   0x1   :  { %v2_v0 = vld [vmem:[%s29_s0] sm:$0xff]  ;;  %v9_v1 = vld [vmem:[%s29_s0 + $0x8] sm:$0xff] }
   0x2   :  { %v6_v2 = vsel %vm5_vm0, %v9_v1, %v2_v0 }
   0x3   :  { %v7_v3 = vrot.slane %v6_v2, 4 }
   0x5   :  { %8 = vst [vmem:[%s30_s1] sm:$0xff] %v7_v3 }

// kernel: split.19
= control target key start
LH: loop header
LB: loop body
LE: loop exit
PB: predicated region body
PF: predicated region fallthrough
CT: control target
= control target key end

     0   :  { %v3_v0 = vlaneseq  ;;  %s28_s0 = inlined_call_operand.vmem [shape: f32[1,10], index: 0, kind: input, shape index: {}]   ;;  %s29_s1 = inlined_call_operand.vmem [shape: f32[1,6], index: 1, kind: output, shape index: {}]  }
   0x1   :  { %v2_v1 = vld [vmem:[%s28_s0] sm:$0x1]  ;;  %s11_s0 = smov 124  }
   0x2   :  { %v4_v2 = vand.u32 127, %v3_v0 }
   0x4   :  { %vm5_vm0 = vcmp.lt.s32.totalorder %v4_v2, 4 }
   0x5   :  { %v6_v3 = vsel %vm5_vm0, 0, %v2_v1 }
   0x6   :  { %7 = vrot.lane.b32.xlu0 %v6_v3, %s11_s0 }
  0x78   :  { %v8_v4 = vpop.permute.xlu0 %7 }
  0x79   :  { %9 = vst [vmem:[%s29_s1] sm:$0x1] %v8_v4 }

// kernel: split.21
= control target key start
LH: loop header
LB: loop body
LE: loop exit
PB: predicated region body
PF: predicated region fallthrough
CT: control target
= control target key end

     0   :  { %vm5_vm0 = vcmask 1043456   ;;  %s29_s0 = inlined_call_operand.vmem [shape: f32[10,16], index: 0, kind: input, shape index: {}]   ;;  %s30_s1 = inlined_call_operand.vmem [shape: f32[6,16], index: 1, kind: output, shape index: {}]  }
   0x1   :  { %v2_v0 = vld [vmem:[%s29_s0] sm:$0xff]  ;;  %v9_v1 = vld [vmem:[%s29_s0 + $0x8] sm:$0xff] }
   0x2   :  { %v6_v2 = vsel %vm5_vm0, %v9_v1, %v2_v0 }
   0x3   :  { %v7_v3 = vrot.slane %v6_v2, 4 }
   0x5   :  { %8 = vst [vmem:[%s30_s1] sm:$0xff] %v7_v3 }

// kernel: msg_model_diff.1
= control target key start
LH: loop header
LB: loop body
LE: loop exit
PB: predicated region body
PF: predicated region fallthrough
CT: control target
= control target key end

     0   :  { %v3867_v0 = vmov 0   ;;  %v3868_v1 = vmov 1   ;;  %v32_v5 = vlaneseq  ;;  %vm64_vm0 = vcmask 64512   ;;  %s4390_s1 = inlined_call_operand.vmem [shape: s32[16,2], index: 1, kind: input, shape index: {}]   ;;  %s4391_s2 = inlined_call_operand.vmem [shape: f32[8,4], index: 2, kind: input, shape index: {}]   ;;  %s4392_s4 = inlined_call_operand.vmem [shape: f32[80,16], index: 4, kind: input, shape index: {}]   ;;  %s4393_s0 = inlined_call_operand.vmem [shape: s32[2,16], index: 0, kind: input, shape index: {}]   ;;  %s4394_s3 = inlined_call_operand.vmem [shape: f32[8,4], index: 3, kind: input, shape index: {}]   ;;  %s4395_s5 = inlined_call_operand.vmem [shape: f32[184,40], index: 5, kind: input, shape index: {}]   ;;  %s4396_s6 = inlined_call_operand.vmem [shape: f32[160,64], index: 6, kind: input, shape index: {}]   ;;  %s4397_s7 = inlined_call_operand.vmem [shape: f32[144,128], index: 7, kind: input, shape index: {}]   ;;  %s4398_s8 = inlined_call_operand.vmem [shape: f32[8,128], index: 8, kind: output, shape index: {}]  }
   0x1   :  { %3865 = vset.pattern.permute.xlu1 %v3867_v0  ;;  %3864 = vset.pattern.permute.xlu0 %v3868_v1  ;;  %v29_v2 = vld [vmem:[%s4390_s1] sm:$0xff]  ;;  %v30_v4 = vld [vmem:[%s4390_s1 + $0x8] sm:$0xff]  ;;  %v3869_v9 = vmov 0.0   ;;  %vm236_vm5 = vcmask 1043456   ;;  %vm229_vm6 = vcmask 31744   ;;  %v411_v24 = vld [vmem:[%s4392_s4 + $0x18] sm:$0xff] }
   0x2   :  { %v3922_v3 = vld [vmem:[%s4391_s2] sm:$0xff]  ;;  %47 = vperm.xlu1 %3865, %v29_v2   ;;  %37 = vperm.xlu0 %3864, %v29_v2   ;;  %v33_v6 = vand.u32 127, %v32_v5  ;;  %v321_v17 = vld [vmem:[%s4392_s4 + $0x8] sm:$0xf]  ;;  %v3363_v25 = vld [vmem:[%s4392_s4 + $0x10] ss:$0 sm:$0xff] }
   0x3   :  { %3599 = vmatprep.subr.mxu0 %v3922_v3  ;;  %3604 = vmatprep.subr.mxu1 %v3922_v3  ;;  %v228_v16 = vld [vmem:[%s4392_s4] sm:$0xf]  ;;  %vm418_vm7 = vcmask 130048   ;;  %v504_v36 = vld [vmem:[%s4392_s4 + $0x30] sm:$0xf]  ;;  %vm3870_vm8 = vmmov 0  }
   0x4   :  { %3600 = vmatpush3.msra.mxu0 %v3922_v3  ;;  %3605 = vmatpush3.msra.mxu1 %v3922_v3  ;;  %v412_v23 = vld [vmem:[%s4392_s4 + $0x20] sm:$0xff]  ;;  %v3367_v37 = vld [vmem:[%s4392_s4 + $0x28] ss:$0 sm:$0xff]  ;;  %v35_v46 = vshrl.u32 %v32_v5, 7  ;;  %v3373_v48 = vld [vmem:[%s4392_s4 + $0x38] ss:$0 sm:$0xff] }
   0x5   :  { %3609 = vmatprep.subr.msk.mxu0 %vm236_vm5, %v228_v16  ;;  %3614 = vmatprep.subr.msk.mxu1 %vm236_vm5, %v321_v17  ;;  %v673_v45 = vld [vmem:[%s4392_s4 + $0x40] sm:$0xf]  ;;  %v3374_v58 = vld [vmem:[%s4392_s4 + $0x48] ss:$0 sm:$0xff]  ;;  %v1143_v1 = vld [vmem:[%s4395_s5 + $0x10] sm:$0xf] }
   0x6   :  { %50 = vperm.xlu1 %3865, %v30_v4   ;;  %40 = vperm.xlu0 %3864, %v30_v4   ;;  %v3355_v47 = vld [vmem:[%s4393_s0 + $0x1] ss:$0 sm:$0xff]  ;;  %v1230_v5 = vld [vmem:[%s4395_s5 + $0x8] sm:$0x3f]  ;;  %vm1238_vm10 = vcmask 1045504   ;;  %vm1231_vm11 = vcmask 48128  }
   0x7   :  { %vm60_vm9 = vcmp.eq.s32.totalorder %v35_v46, %v3355_v47  ;;  %v4014_v54 = vld [vmem:[%s4394_s3] sm:$0xff]  ;;  %vm1419_vm12 = vcmask 326656   ;;  %vm2345_vm13 = vcmask 523264   ;;  %vm2825_vm14 = vcmask 97280  }
   0x8   :  { %v4009_v53 = vsel %vm60_vm9, 1.0, %v3869_v9  ;;  %v1052_v57 = vld [vmem:[%s4395_s5] sm:$0xf]  ;;  %vm3018_vm15 = vcmask 392192  }
   0xa   :  { %3866 = vset.pattern.permute.xlu0 %v3867_v0 }
  0x7d   :  { %v48_v7 = vpop.permute.xlu1 %47  ;;  %v38_v8 = vpop.permute.xlu0 %37 }
  0x7e   :  { %vm52_vm1 = vcmp.eq.s32.totalorder %v33_v6, %v48_v7  ;;  %vm42_vm2 = vcmp.eq.s32.totalorder %v33_v6, %v38_v8 }
  0x7f   :  { %v3933_v10 = vsel %vm52_vm1, 1.0, %v3869_v9  ;;  %v3936_v11 = vsel %vm42_vm2, 1.0, %v3869_v9 }
  0x80   :  { %3601 = vmatprep.mubr.msk.f32.mxu0 %vm64_vm0, %v3936_v11  ;;  %3606 = vmatprep.mubr.msk.f32.mxu1 %vm64_vm0, %v3933_v10 }
  0x81   :  { %v51_v12 = vpop.permute.xlu1 %50  ;;  %v41_v13 = vpop.permute.xlu0 %40 }
  0x82   :  { %vm53_vm3 = vcmp.eq.s32.totalorder %v33_v6, %v51_v12  ;;  %vm43_vm4 = vcmp.eq.s32.totalorder %v33_v6, %v41_v13  ;;  %v1319_v6 = vld [vmem:[%s4395_s5 + $0x18] sm:$0x3f] }
  0x83   :  { %v3943_v14 = vsel %vm53_vm3, 1.0, %v3869_v9  ;;  %v3946_v15 = vsel %vm43_vm4, 1.0, %v3869_v9 }
  0x84   :  { %3602 = vmatmul.mubr.msk.f32.vlgmr.msra.gmra.mxu0 %vm64_vm0, %v3946_v15  ;;  %3607 = vmatmul.mubr.msk.f32.vlgmr.msra.gmra.mxu1 %vm64_vm0, %v3943_v14 }
  0x85   :  { %3610 = vmatpush3.msk.msra.mxu0 %vm236_vm5, %v228_v16  ;;  %3615 = vmatpush3.msk.msra.mxu1 %vm236_vm5, %v321_v17 }
  0x86   :  { %3619 = vmatprep.subr.mxu0 %v412_v23  ;;  %3626 = vmatprep.subr.msk.mxu1 %vm236_vm5, %v504_v36 }
 0x144   :  { %v3603_v18 = vpop.f32.mrf.mxu0  ;;  %v3608_v19 = vpop.f32.mrf.mxu1 }
 0x145   :  { %v501_v20 = vsub.f32 %v3603_v18, %v3608_v19 }
 0x146   :  { %v137_v21 = vpop.f32.mrf.mxu0  ;;  %v218_v22 = vpop.f32.mrf.mxu1 }
 0x147   :  { %3611 = vmatprep.mubr.msk.f32.mxu0 %vm229_vm6, %v137_v21  ;;  %3616 = vmatprep.mubr.msk.f32.mxu1 %vm229_vm6, %v218_v22  ;;  %v500_v41 = vsub.f32 %v137_v21, %v218_v22  ;;  %v1410_v21 = vld [vmem:[%s4395_s5 + $0x30] sm:$0xff]  ;;  %v1409_v22 = vld [vmem:[%s4395_s5 + $0x28] sm:$0xff] }
 0x148   :  { %3612 = vmatmul.mubr.msk.f32.vlgmr.msra.gmra.mxu0 %vm229_vm6, %v3603_v18  ;;  %3617 = vmatmul.mubr.msk.f32.vlgmr.msra.gmra.mxu1 %vm229_vm6, %v3608_v19  ;;  %v1413_v18 = vld [vmem:[%s4395_s5 + $0x48] sm:$0xff]  ;;  %v1412_v19 = vld [vmem:[%s4395_s5 + $0x40] sm:$0xff] }
 0x149   :  { %3620 = vmatpush3.msra.mxu0 %v412_v23  ;;  %3627 = vmatpush3.msk.msra.mxu1 %vm236_vm5, %v504_v36 }
 0x14a   :  { %3621 = vmatprep.subr.mxu0 %v411_v24  ;;  %3638 = vmatprep.subr.mxu1 %v3869_v9 }
 0x14b   :  { %3622 = vmatpush3.msra.mxu0 %v411_v24 }
 0x14c   :  { %3631 = vmatprep.subr.mxu0 %v3869_v9 }
 0x208   :  { %v3613_v26 = vpop.f32.mrf.mxu0  ;;  %v3618_v27 = vpop.f32.mrf.mxu1 }
 0x209   :  { %v320_v28 = vadd.f32 %v3613_v26, %v3363_v25 }
 0x20a   :  { %v306_v29 = vpop.f32.mrf.mxu0  ;;  %v397_v32 = vpop.f32.mrf.mxu1 }
 0x20b   :  { %v319_v30 = vadd.f32 %v3363_v25, %v306_v29  ;;  %v407_v31 = vadd.f32 %v3618_v27, %v320_v28  ;;  %v3389_v25 = vld [vmem:[%s4395_s5 + $0x20] ss:$0 sm:$0xff] }
 0x20d   :  { %v406_v33 = vadd.f32 %v397_v32, %v319_v30  ;;  %v409_v35 = vmax.f32 %v407_v31, 0.0 }
 0x20f   :  { %v408_v34 = vmax.f32 %v406_v33, 0.0 }
 0x211   :  { %3623 = vmatprep.mubr.msk.f32.mxu0 %vm418_vm7, %v408_v34 }
 0x212   :  { %3624 = vmatmul.mubr.msk.f32.vlgmr.msra.gmra.mxu0 %vm418_vm7, %v409_v35 }
 0x213   :  { %3635 = vmatprep.mubr.msk.f32.mxu0 %vm3870_vm8, %v3869_v9 }
 0x2d2   :  { %v3625_v38 = vpop.f32.mrf.mxu0 }
 0x2d3   :  { %v497_v39 = vadd.f32 %v3625_v38, %v3367_v37 }
 0x2d4   :  { %v491_v40 = vpop.f32.mrf.mxu0 }
 0x2d5   :  { %v492_v42 = vadd.f32 %v3367_v37, %v491_v40  ;;  %v503_v44 = vmul.f32 %v501_v20, %v497_v39  ;;  %v1411_v20 = vld [vmem:[%s4395_s5 + $0x38] sm:$0xff] }
 0x2d7   :  { %v502_v43 = vmul.f32 %v500_v41, %v492_v42  ;;  %v1505_v42 = vld [vmem:[%s4395_s5 + $0x88] sm:$0xf] }
 0x2d9   :  { %3628 = vmatprep.mubr.msk.f32.mxu1 %vm229_vm6, %v502_v43  ;;  %v1600_v43 = vld [vmem:[%s4395_s5 + $0x70] sm:$0xff] }
 0x2da   :  { %3629 = vmatmul.mubr.msk.f32.vlgmr.msra.gmra.mxu1 %vm229_vm6, %v503_v44  ;;  %v3399_v44 = vld [vmem:[%s4395_s5 + $0x78] ss:$0 sm:$0xff] }
 0x2db   :  { %3639 = vmatpush3.msk.msra.mxu1 %vm236_vm5, %v673_v45  ;;  %3640 = vmatprep.mubr.msk.f32.mxu1 %vm3870_vm8, %v3869_v9 }
 0x2de   :  { %3641 = vmatmul.mubr.msk.f32.vlgmr.msra.gmra.mxu1 %vm229_vm6, %v3922_v3 }
 0x2df   :  { %3650 = vmatprep.mubr.msk.f32.mxu1 %vm64_vm0, %v3936_v11 }
 0x39a   :  { %v3630_v49 = vpop.f32.mrf.mxu1 }
 0x39b   :  { %v594_v50 = vadd.f32 %v3630_v49, %v3373_v48 }
 0x39c   :  { %v580_v51 = vpop.f32.mrf.mxu1 }
 0x39d   :  { %v593_v52 = vadd.f32 %v3373_v48, %v580_v51  ;;  %3632 = vmatpush3.msra.mxu0 %v594_v50 }
 0x39e   :  { %3633 = vmatprep.subr.mxu0 %v3869_v9  ;;  %v746_v55 = vpop.f32.mrf.mxu1 }
 0x39f   :  { %3634 = vmatpush3.msra.mxu0 %v593_v52  ;;  %v1599_v52 = vld [vmem:[%s4395_s5 + $0x68] sm:$0xff] }
 0x3a0   :  { %3636 = vmatmul.mubr.msk.f32.vlgmr.msra.gmra.mxu0 %vm418_vm7, %v4009_v53  ;;  %3643 = vmatprep.subr.mxu0 %v4014_v54  ;;  %v3642_v56 = vpop.f32.mrf.mxu1 }
 0x3a1   :  { %3645 = vmatprep.mubr.msk.f32.mxu0 %vm64_vm0, %v3936_v11  ;;  %3644 = vmatpush3.msra.mxu0 %v4014_v54  ;;  %v1597_v56 = vld [vmem:[%s4395_s5 + $0x58] sm:$0xff] }
 0x3a2   :  { %3653 = vmatprep.subr.mxu0 %v4014_v54 }
 0x3a4   :  { %3646 = vmatmul.mubr.msk.f32.vlgmr.msra.gmra.mxu0 %vm64_vm0, %v3946_v15 }
 0x3a5   :  { %3655 = vmatprep.mubr.msk.f32.mxu0 %vm64_vm0, %v3933_v10  ;;  %3654 = vmatpush3.msra.mxu0 %v4014_v54 }
 0x3a6   :  { %3663 = vmatprep.subr.msk.mxu0 %vm236_vm5, %v1052_v57 }
 0x3a8   :  { %3656 = vmatmul.mubr.msk.f32.vlgmr.msra.gmra.mxu0 %vm64_vm0, %v3943_v14 }
 0x3a9   :  { %3664 = vmatpush3.msk.msra.mxu0 %vm236_vm5, %v1052_v57  ;;  %v1596_v57 = vld [vmem:[%s4395_s5 + $0x50] sm:$0xff] }
 0x3aa   :  { %3673 = vmatprep.subr.msk.mxu0 %vm1238_vm10, %v1230_v5 }
 0x460   :  { %v669_v59 = vpop.f32.mrf.mxu0 }
 0x461   :  { %v670_v60 = vadd.f32 %v3374_v58, %v669_v59  ;;  %v1847_v58 = vld [vmem:[%s4395_s5 + $0xa0] sm:$0xf]  ;;  %v1685_v59 = vld [vmem:[%s4395_s5 + $0x90] sm:$0x3f] }
 0x462   :  { %v3637_v61 = vpop.f32.mrf.mxu0 }
 0x463   :  { %v4039_v62 = vadd.f32 %v746_v55, %v670_v60  ;;  %v1598_v55 = vld [vmem:[%s4395_s5 + $0x60] sm:$0xff] }
 0x464   :  { %v4041_v63 = vpop.f32.mrf.mxu0 }
 0x465   :  { %3648 = vmatprep.subr.mxu1 %v4039_v62 }
 0x466   :  { %v4044_v0 = vpop.f32.mrf.mxu0  ;;  %3649 = vmatpush3.msra.mxu1 %v4039_v62 }
 0x467   :  { %3651 = vmatmul.mubr.msk.f32.vlgmr.msra.gmra.mxu1 %vm64_vm0, %v3946_v15  ;;  %3658 = vmatprep.subr.mxu1 %v4039_v62 }
 0x468   :  { %3665 = vmatprep.mubr.msk.f32.mxu0 %vm229_vm6, %v4044_v0  ;;  %v4055_v2 = vpop.f32.mrf.mxu0  ;;  %3659 = vmatpush3.msra.mxu1 %v4039_v62 }
 0x469   :  { %v1502_v3 = vsub.f32 %v4041_v63, %v4055_v2  ;;  %3660 = vmatprep.mubr.msk.f32.mxu1 %vm64_vm0, %v3933_v10  ;;  %3666 = vmatmul.mubr.msk.f32.vlgmr.msra.gmra.mxu0 %vm229_vm6, %v4041_v63  ;;  %v3406_v63 = vld [vmem:[%s4395_s5 + $0x80] ss:$0 sm:$0xff] }
 0x46a   :  { %v4064_v4 = vpop.f32.mrf.mxu0  ;;  %3668 = vmatprep.subr.msk.mxu1 %vm236_vm5, %v1143_v1  ;;  %3674 = vmatpush3.msk.msra.mxu0 %vm1238_vm10, %v1230_v5  ;;  %v3405_v5 = vld [vmem:[%s4395_s5 + $0x98] ss:$0 sm:$0xff] }
 0x46b   :  { %3661 = vmatmul.mubr.msk.f32.vlgmr.msra.gmra.mxu1 %vm64_vm0, %v3943_v14  ;;  %3683 = vmatprep.subr.mxu0 %v1413_v18  ;;  %v1501_v48 = vsub.f32 %v4044_v0, %v4064_v4 }
 0x46c   :  { %3670 = vmatprep.mubr.msk.f32.mxu1 %vm229_vm6, %v4064_v4  ;;  %3669 = vmatpush3.msk.msra.mxu1 %vm236_vm5, %v1143_v1 }
 0x46d   :  { %3678 = vmatprep.subr.msk.mxu1 %vm1238_vm10, %v1319_v6 }
 0x46f   :  { %3671 = vmatmul.mubr.msk.f32.vlgmr.msra.gmra.mxu1 %vm229_vm6, %v4055_v2 }
 0x470   :  { %3679 = vmatpush3.msk.msra.mxu1 %vm1238_vm10, %v1319_v6 }
 0x471   :  { %3696 = vmatprep.subr.msk.mxu1 %vm236_vm5, %v1505_v42 }
 0x527   :  { %v4084_v7 = vpop.f32.mrf.mxu1 }
 0x529   :  { %v4086_v8 = vpop.f32.mrf.mxu1  ;;  %v3667_v23 = vpop.f32.mrf.mxu0 }
 0x52a   :  { %3675 = vmatprep.mubr.msk.f32.mxu0 %vm1231_vm11, %v4086_v8  ;;  %v1142_v27 = vadd.f32 %v3667_v23, %v3389_v25 }
 0x52b   :  { %v4090_v12 = vpop.f32.mrf.mxu1  ;;  %3676 = vmatmul.mubr.msk.f32.vlgmr.msra.gmra.mxu0 %vm1231_vm11, %v4084_v7  ;;  %v1128_v26 = vpop.f32.mrf.mxu0 }
 0x52c   :  { %v1682_v13 = vsub.f32 %v4084_v7, %v4090_v12  ;;  %3684 = vmatpush3.msra.mxu0 %v1413_v18  ;;  %v1141_v30 = vadd.f32 %v3389_v25, %v1128_v26  ;;  %v1925_v7 = vld [vmem:[%s4395_s5 + $0xa8] sm:$0x3f] }
 0x52d   :  { %v4096_v16 = vpop.f32.mrf.mxu1  ;;  %3685 = vmatprep.subr.mxu0 %v1412_v19 }
 0x52e   :  { %v1681_v17 = vsub.f32 %v4086_v8, %v4096_v16  ;;  %3680 = vmatprep.mubr.msk.f32.mxu1 %vm1231_vm11, %v4096_v16  ;;  %3686 = vmatpush3.msra.mxu0 %v1412_v19 }
 0x52f   :  { %3681 = vmatmul.mubr.msk.f32.vlgmr.msra.gmra.mxu1 %vm1231_vm11, %v4090_v12  ;;  %3687 = vmatprep.subr.mxu0 %v1411_v20  ;;  %v3672_v24 = vpop.f32.mrf.mxu1 }
 0x530   :  { %3688 = vmatpush3.msra.mxu0 %v1411_v20  ;;  %v1229_v31 = vadd.f32 %v3672_v24, %v1142_v27  ;;  %3697 = vmatpush3.msk.msra.mxu1 %vm236_vm5, %v1505_v42  ;;  %v3412_v20 = vld [vmem:[%s4395_s5 + $0xb0] ss:$0 sm:$0xff]  ;;  %v2334_v42 = vld [vmem:[%s4396_s6 + $0x38] sm:$0xff] }
 0x531   :  { %3689 = vmatprep.subr.mxu0 %v1410_v21  ;;  %v1219_v28 = vpop.f32.mrf.mxu1  ;;  %3701 = vmatprep.subr.mxu1 %v1600_v43 }
 0x532   :  { %3690 = vmatpush3.msra.mxu0 %v1410_v21  ;;  %v1228_v33 = vadd.f32 %v1219_v28, %v1141_v30  ;;  %v2155_v30 = vld [vmem:[%s4396_s6] sm:$0xff] }
 0x533   :  { %3691 = vmatprep.subr.mxu0 %v1409_v22 }
 0x534   :  { %3692 = vmatpush3.msra.mxu0 %v1409_v22 }
 0x535   :  { %3714 = vmatprep.subr.msk.mxu0 %vm1238_vm10, %v1685_v59 }
 0x5eb   :  { %v3677_v29 = vpop.f32.mrf.mxu0 }
 0x5ec   :  { %v1318_v34 = vadd.f32 %v3677_v29, %v1229_v31  ;;  %v2245_v29 = vld [vmem:[%s4396_s6 + $0x18] sm:$0xff]  ;;  %v2244_v31 = vld [vmem:[%s4396_s6 + $0x10] sm:$0xff] }
 0x5ed   :  { %v1308_v32 = vpop.f32.mrf.mxu0 }
 0x5ee   :  { %v1317_v36 = vadd.f32 %v1308_v32, %v1228_v33  ;;  %v2339_v32 = vld [vmem:[%s4396_s6 + $0x60] sm:$0xff] }
 0x5ef   :  { %v3682_v35 = vpop.f32.mrf.mxu1 }
 0x5f0   :  { %v1405_v37 = vadd.f32 %v3682_v35, %v1318_v34 }
 0x5f1   :  { %v1395_v38 = vpop.f32.mrf.mxu1 }
 0x5f2   :  { %v1404_v39 = vadd.f32 %v1395_v38, %v1317_v36  ;;  %v1407_v41 = vmax.f32 %v1405_v37, 0.0  ;;  %v2338_v38 = vld [vmem:[%s4396_s6 + $0x58] sm:$0xff] }
 0x5f4   :  { %v1406_v40 = vmax.f32 %v1404_v39, 0.0  ;;  %v2337_v39 = vld [vmem:[%s4396_s6 + $0x50] sm:$0xff] }
 0x5f6   :  { %3693 = vmatprep.mubr.msk.f32.mxu0 %vm1419_vm12, %v1406_v40 }
 0x5f7   :  { %3694 = vmatmul.mubr.msk.f32.vlgmr.msra.gmra.mxu0 %vm1419_vm12, %v1407_v41 }
 0x5f8   :  { %3715 = vmatpush3.msk.msra.mxu0 %vm1238_vm10, %v1685_v59  ;;  %v2431_v59 = vld [vmem:[%s4396_s6 + $0x70] sm:$0xff] }
 0x5f9   :  { %3719 = vmatprep.subr.mxu0 %v3869_v9 }
 0x6b7   :  { %v3695_v45 = vpop.f32.mrf.mxu0 }
 0x6b8   :  { %v1498_v46 = vadd.f32 %v3695_v45, %v3399_v44  ;;  %v3424_v45 = vld [vmem:[%s4396_s6 + $0x20] ss:$0 sm:$0xff] }
 0x6b9   :  { %v1492_v47 = vpop.f32.mrf.mxu0 }
 0x6ba   :  { %v1493_v49 = vadd.f32 %v3399_v44, %v1492_v47  ;;  %v1504_v51 = vmul.f32 %v1502_v3, %v1498_v46  ;;  %v2332_v44 = vld [vmem:[%s4396_s6 + $0x28] sm:$0xff] }
 0x6bc   :  { %v1503_v50 = vmul.f32 %v1501_v48, %v1493_v49 }
 0x6be   :  { %3698 = vmatprep.mubr.msk.f32.mxu1 %vm229_vm6, %v1503_v50 }
 0x6bf   :  { %3699 = vmatmul.mubr.msk.f32.vlgmr.msra.gmra.mxu1 %vm229_vm6, %v1504_v51 }
 0x6c0   :  { %3702 = vmatpush3.msra.mxu1 %v1600_v43  ;;  %3711 = vmatprep.mubr.msk.f32.mxu1 %vm1419_vm12, %v1406_v40  ;;  %v2336_v40 = vld [vmem:[%s4396_s6 + $0x48] sm:$0xff]  ;;  %v2333_v43 = vld [vmem:[%s4396_s6 + $0x30] sm:$0xff] }
 0x6c1   :  { %3703 = vmatprep.subr.mxu1 %v1599_v52 }
 0x6c2   :  { %3704 = vmatpush3.msra.mxu1 %v1599_v52 }
 0x6c3   :  { %3705 = vmatprep.subr.mxu1 %v1598_v55 }
 0x6c4   :  { %3706 = vmatpush3.msra.mxu1 %v1598_v55 }
 0x6c5   :  { %3707 = vmatprep.subr.mxu1 %v1597_v56 }
 0x6c6   :  { %3708 = vmatpush3.msra.mxu1 %v1597_v56 }
 0x6c7   :  { %3709 = vmatprep.subr.mxu1 %v1596_v57 }
 0x6c8   :  { %3710 = vmatpush3.msra.mxu1 %v1596_v57 }
 0x6c9   :  { %3712 = vmatmul.mubr.msk.f32.vlgmr.msra.gmra.mxu1 %vm1419_vm12, %v1407_v41  ;;  %3726 = vmatprep.subr.mxu1 %v3869_v9  ;;  %v2335_v41 = vld [vmem:[%s4396_s6 + $0x40] sm:$0xff] }
 0x6ca   :  { %3727 = vmatpush3.msk.msra.mxu1 %vm236_vm5, %v1847_v58  ;;  %3728 = vmatprep.mubr.msk.f32.mxu1 %vm3870_vm8, %v3869_v9  ;;  %v2432_v58 = vld [vmem:[%s4396_s6 + $0x78] sm:$0xff] }
 0x6cd   :  { %3729 = vmatmul.mubr.msk.f32.vlgmr.msra.gmra.mxu1 %vm229_vm6, %v4014_v54 }
 0x6ce   :  { %3738 = vmatprep.mubr.msk.f32.mxu1 %vm64_vm0, %v3936_v11 }
 0x77f   :  { %v3700_v60 = vpop.f32.mrf.mxu1 }
 0x780   :  { %v1595_v6 = vadd.f32 %v3700_v60, %v3405_v5  ;;  %v3427_v60 = vld [vmem:[%s4396_s6 + $0x68] ss:$0 sm:$0xff] }
 0x781   :  { %v1581_v61 = vpop.f32.mrf.mxu1 }
 0x782   :  { %v1594_v19 = vadd.f32 %v3405_v5, %v1581_v61 }
 0x789   :  { %v3713_v54 = vpop.f32.mrf.mxu1 }
 0x78a   :  { %v1678_v0 = vadd.f32 %v3713_v54, %v3406_v63 }
 0x78b   :  { %v1672_v1 = vpop.f32.mrf.mxu1 }
 0x78c   :  { %v1673_v2 = vadd.f32 %v3406_v63, %v1672_v1  ;;  %v1684_v4 = vmul.f32 %v1682_v13, %v1678_v0 }
 0x78d   :  { %v1920_v12 = vpop.f32.mrf.mxu1 }
 0x78e   :  { %v1683_v3 = vmul.f32 %v1681_v17, %v1673_v2 }
 0x78f   :  { %v3730_v13 = vpop.f32.mrf.mxu1 }
 0x790   :  { %3716 = vmatprep.mubr.msk.f32.mxu0 %vm1231_vm11, %v1683_v3  ;;  %v3432_v3 = vld [vmem:[%s4396_s6 + $0x80] ss:$0 sm:$0xff] }
 0x791   :  { %3717 = vmatmul.mubr.msk.f32.vlgmr.msra.gmra.mxu0 %vm1231_vm11, %v1684_v4 }
 0x792   :  { %3723 = vmatprep.mubr.msk.f32.mxu0 %vm3870_vm8, %v3869_v9 }
 0x851   :  { %v3718_v18 = vpop.f32.mrf.mxu0 }
 0x852   :  { %v1771_v8 = vadd.f32 %v3718_v18, %v1595_v6 }
 0x853   :  { %v1761_v16 = vpop.f32.mrf.mxu0 }
 0x854   :  { %v1770_v17 = vadd.f32 %v1761_v16, %v1594_v19  ;;  %3720 = vmatpush3.msra.mxu0 %v1771_v8  ;;  %v2596_v19 = vld [vmem:[%s4396_s6 + $0x90] sm:$0xff]  ;;  %v2595_v8 = vld [vmem:[%s4396_s6 + $0x88] sm:$0xff]  ;;  %v3433_v16 = vld [vmem:[%s4396_s6 + $0x98] ss:$0 sm:$0xff] }
 0x855   :  { %3721 = vmatprep.subr.mxu0 %v3869_v9 }
 0x856   :  { %3722 = vmatpush3.msra.mxu0 %v1770_v17 }
 0x857   :  { %3724 = vmatmul.mubr.msk.f32.vlgmr.msra.gmra.mxu0 %vm418_vm7, %v4009_v53  ;;  %3731 = vmatprep.subr.mxu0 %v3869_v9 }
 0x858   :  { %3732 = vmatpush3.msk.msra.mxu0 %vm1238_vm10, %v1925_v7  ;;  %3733 = vmatprep.mubr.msk.f32.mxu0 %vm3870_vm8, %v3869_v9 }
 0x85b   :  { %3734 = vmatmul.mubr.msk.f32.vlgmr.msra.gmra.mxu0 %vm1231_vm11, %v4039_v62  ;;  %v2156_v62 = vld [vmem:[%s4396_s6 + $0x8] sm:$0xff] }
 0x85c   :  { %3743 = vmatprep.mubr.msk.f32.mxu0 %vm64_vm0, %v3933_v10 }
 0x917   :  { %v1843_v21 = vpop.f32.mrf.mxu0 }
 0x918   :  { %v1844_v22 = vadd.f32 %v3412_v20, %v1843_v21 }
 0x919   :  { %v3725_v23 = vpop.f32.mrf.mxu0 }
 0x91a   :  { %v1924_v24 = vadd.f32 %v1920_v12, %v1844_v22  ;;  %v2917_v23 = vld [vmem:[%s4397_s7 + $0x18] sm:$0xf] }
 0x91b   :  { %v1998_v25 = vpop.f32.mrf.mxu0 }
 0x91c   :  { %v2002_v26 = vadd.f32 %v1998_v25, %v1924_v24  ;;  %v3012_v24 = vld [vmem:[%s4397_s7 + $0x50] sm:$0xff] }
 0x91d   :  { %v3735_v27 = vpop.f32.mrf.mxu0 }
 0x91e   :  { %v4206_v28 = vmax.f32 %v2002_v26, 0.0 }
 0x920   :  { %3736 = vmatprep.subr.mxu1 %v4206_v28  ;;  %3741 = vmatprep.subr.mxu0 %v4206_v28 }
 0x921   :  { %3737 = vmatpush3.msra.mxu1 %v4206_v28  ;;  %3742 = vmatpush3.msra.mxu0 %v4206_v28 }
 0x922   :  { %3739 = vmatmul.mubr.msk.f32.vlgmr.msra.gmra.mxu1 %vm64_vm0, %v3946_v15  ;;  %3744 = vmatmul.mubr.msk.f32.vlgmr.msra.gmra.mxu0 %vm64_vm0, %v3943_v14 }
 0x923   :  { %3746 = vmatprep.subr.mxu1 %v2156_v62  ;;  %3753 = vmatprep.subr.mxu0 %v2245_v29 }
 0x924   :  { %3747 = vmatpush3.msra.mxu1 %v2156_v62  ;;  %3754 = vmatpush3.msra.mxu0 %v2245_v29  ;;  %v3011_v29 = vld [vmem:[%s4397_s7 + $0x48] sm:$0xff] }
 0x925   :  { %3748 = vmatprep.subr.mxu1 %v2155_v30  ;;  %3755 = vmatprep.subr.mxu0 %v2244_v31 }
 0x926   :  { %3749 = vmatpush3.msra.mxu1 %v2155_v30  ;;  %3756 = vmatpush3.msra.mxu0 %v2244_v31  ;;  %v3010_v30 = vld [vmem:[%s4397_s7 + $0x40] sm:$0xff]  ;;  %v3009_v31 = vld [vmem:[%s4397_s7 + $0x38] sm:$0xff] }
 0x927   :  { %3760 = vmatprep.subr.mxu1 %v2339_v32  ;;  %3779 = vmatprep.subr.mxu0 %v2432_v58 }
 0x9e2   :  { %v3740_v33 = vpop.f32.mrf.mxu1  ;;  %v3745_v34 = vpop.f32.mrf.mxu0 }
 0x9e3   :  { %v2428_v35 = vsub.f32 %v3740_v33, %v3745_v34 }
 0x9e4   :  { %v2070_v36 = vpop.f32.mrf.mxu1  ;;  %v2145_v37 = vpop.f32.mrf.mxu0 }
 0x9e5   :  { %3750 = vmatprep.mubr.msk.f32.mxu1 %vm418_vm7, %v2070_v36  ;;  %3757 = vmatprep.mubr.msk.f32.mxu0 %vm418_vm7, %v2145_v37  ;;  %v2427_v54 = vsub.f32 %v2070_v36, %v2145_v37 }
 0x9e6   :  { %3751 = vmatmul.mubr.msk.f32.vlgmr.msra.gmra.mxu1 %vm418_vm7, %v3740_v33  ;;  %3758 = vmatmul.mubr.msk.f32.vlgmr.msra.gmra.mxu0 %vm418_vm7, %v3745_v34  ;;  %v3007_v33 = vld [vmem:[%s4397_s7 + $0x28] sm:$0xff]  ;;  %v3443_v34 = vld [vmem:[%s4397_s7 + $0x20] ss:$0 sm:$0xff] }
 0x9e7   :  { %3761 = vmatpush3.msra.mxu1 %v2339_v32  ;;  %3780 = vmatpush3.msra.mxu0 %v2432_v58  ;;  %v3008_v32 = vld [vmem:[%s4397_s7 + $0x30] sm:$0xff] }
 0x9e8   :  { %3762 = vmatprep.subr.mxu1 %v2338_v38  ;;  %3781 = vmatprep.subr.mxu0 %v2431_v59 }
 0x9e9   :  { %3763 = vmatpush3.msra.mxu1 %v2338_v38  ;;  %3782 = vmatpush3.msra.mxu0 %v2431_v59 }
 0x9ea   :  { %3764 = vmatprep.subr.mxu1 %v2337_v39  ;;  %3786 = vmatprep.subr.mxu0 %v3869_v9 }
 0x9eb   :  { %3765 = vmatpush3.msra.mxu1 %v2337_v39 }
 0x9ec   :  { %3766 = vmatprep.subr.mxu1 %v2336_v40 }
 0x9ed   :  { %3767 = vmatpush3.msra.mxu1 %v2336_v40 }
 0x9ee   :  { %3768 = vmatprep.subr.mxu1 %v2335_v41 }
 0x9ef   :  { %3769 = vmatpush3.msra.mxu1 %v2335_v41 }
 0x9f0   :  { %3770 = vmatprep.subr.mxu1 %v2334_v42 }
 0x9f1   :  { %3771 = vmatpush3.msra.mxu1 %v2334_v42 }
 0x9f2   :  { %3772 = vmatprep.subr.mxu1 %v2333_v43 }
 0x9f3   :  { %3773 = vmatpush3.msra.mxu1 %v2333_v43 }
 0x9f4   :  { %3774 = vmatprep.subr.mxu1 %v2332_v44 }
 0x9f5   :  { %3775 = vmatpush3.msra.mxu1 %v2332_v44 }
 0xaa6   :  { %v3752_v46 = vpop.f32.mrf.mxu1  ;;  %v3759_v47 = vpop.f32.mrf.mxu0 }
 0xaa7   :  { %v2243_v48 = vadd.f32 %v3752_v46, %v3424_v45  ;;  %v3104_v46 = vld [vmem:[%s4397_s7 + $0x60] sm:$0xff] }
 0xaa8   :  { %v2229_v49 = vpop.f32.mrf.mxu1  ;;  %v2318_v52 = vpop.f32.mrf.mxu0 }
 0xaa9   :  { %v2242_v50 = vadd.f32 %v3424_v45, %v2229_v49  ;;  %v2328_v51 = vadd.f32 %v3759_v47, %v2243_v48  ;;  %v3105_v45 = vld [vmem:[%s4397_s7 + $0x68] sm:$0xf]  ;;  %v3447_v47 = vld [vmem:[%s4397_s7 + $0x58] ss:$0 sm:$0xff] }
 0xaab   :  { %v2327_v55 = vadd.f32 %v2318_v52, %v2242_v50  ;;  %v2330_v57 = vmax.f32 %v2328_v51, 0.0 }
 0xaad   :  { %v2329_v56 = vmax.f32 %v2327_v55, 0.0 }
 0xaaf   :  { %3776 = vmatprep.mubr.msk.f32.mxu1 %vm2345_vm13, %v2329_v56 }
 0xab0   :  { %3777 = vmatmul.mubr.msk.f32.vlgmr.msra.gmra.mxu1 %vm2345_vm13, %v2330_v57  ;;  %v3453_v57 = vld [vmem:[%s4397_s7 + $0x70] ss:$0 sm:$0xff] }
 0xab1   :  { %3807 = vmatprep.mubr.msk.f32.mxu1 %vm64_vm0, %v3933_v10 }
 0xb70   :  { %v3778_v61 = vpop.f32.mrf.mxu1 }
 0xb71   :  { %v2424_v10 = vadd.f32 %v3778_v61, %v3427_v60 }
 0xb72   :  { %v2418_v63 = vpop.f32.mrf.mxu1 }
 0xb73   :  { %v2419_v0 = vadd.f32 %v3427_v60, %v2418_v63  ;;  %v2430_v2 = vmul.f32 %v2428_v35, %v2424_v10  ;;  %v3272_v10 = vld [vmem:[%s4397_s7 + $0x80] sm:$0xf]  ;;  %v3271_v63 = vld [vmem:[%s4397_s7 + $0x78] sm:$0xff] }
 0xb75   :  { %v2429_v1 = vmul.f32 %v2427_v54, %v2419_v0 }
 0xb77   :  { %3783 = vmatprep.mubr.msk.f32.mxu0 %vm418_vm7, %v2429_v1 }
 0xb78   :  { %3784 = vmatmul.mubr.msk.f32.vlgmr.msra.gmra.mxu0 %vm418_vm7, %v2430_v2 }
 0xb79   :  { %3790 = vmatprep.mubr.msk.f32.mxu0 %vm3870_vm8, %v3869_v9 }
 0xc38   :  { %v3785_v4 = vpop.f32.mrf.mxu0 }
 0xc39   :  { %v2519_v5 = vadd.f32 %v3785_v4, %v3432_v3 }
 0xc3a   :  { %v2505_v6 = vpop.f32.mrf.mxu0 }
 0xc3b   :  { %v2518_v18 = vadd.f32 %v3432_v3, %v2505_v6  ;;  %3787 = vmatpush3.msra.mxu0 %v2519_v5 }
 0xc3c   :  { %3788 = vmatprep.subr.mxu0 %v3869_v9 }
 0xc3d   :  { %3789 = vmatpush3.msra.mxu0 %v2518_v18 }
 0xc3e   :  { %3791 = vmatmul.mubr.msk.f32.vlgmr.msra.gmra.mxu0 %vm418_vm7, %v4009_v53  ;;  %3793 = vmatprep.subr.mxu0 %v3869_v9 }
 0xc3f   :  { %3794 = vmatpush3.msra.mxu0 %v2596_v19  ;;  %3797 = vmatprep.mubr.msk.f32.mxu0 %vm3870_vm8, %v3869_v9 }
 0xc40   :  { %3795 = vmatprep.subr.mxu0 %v3869_v9 }
 0xc41   :  { %3796 = vmatpush3.msra.mxu0 %v2595_v8 }
 0xc42   :  { %3798 = vmatmul.mubr.msk.f32.vlgmr.msra.gmra.mxu0 %vm418_vm7, %v4206_v28 }
 0xc43   :  { %3802 = vmatprep.mubr.msk.f32.mxu0 %vm64_vm0, %v3936_v11  ;;  %v2824_v11 = vld [vmem:[%s4397_s7 + $0x8] sm:$0xf] }
 0xcfe   :  { %v2591_v17 = vpop.f32.mrf.mxu0 }
 0xcff   :  { %v2592_v12 = vadd.f32 %v3433_v16, %v2591_v17 }
 0xd00   :  { %v3792_v7 = vpop.f32.mrf.mxu0 }
 0xd02   :  { %v2666_v13 = vpop.f32.mrf.mxu0 }
 0xd03   :  { %v2670_v20 = vadd.f32 %v2666_v13, %v2592_v12 }
 0xd04   :  { %v3799_v21 = vpop.f32.mrf.mxu0 }
 0xd05   :  { %v4298_v22 = vmax.f32 %v2670_v20, 0.0 }
 0xd07   :  { %3800 = vmatprep.subr.mxu0 %v4298_v22  ;;  %3805 = vmatprep.subr.mxu1 %v4298_v22 }
 0xd08   :  { %3801 = vmatpush3.msra.mxu0 %v4298_v22  ;;  %3806 = vmatpush3.msra.mxu1 %v4298_v22 }
 0xd09   :  { %3803 = vmatmul.mubr.msk.f32.vlgmr.msra.gmra.mxu0 %vm64_vm0, %v3946_v15  ;;  %3808 = vmatmul.mubr.msk.f32.vlgmr.msra.gmra.mxu1 %vm64_vm0, %v3943_v14  ;;  %v2823_v14 = vld [vmem:[%s4397_s7] sm:$0xff]  ;;  %v2916_v15 = vld [vmem:[%s4397_s7 + $0x10] sm:$0xff] }
 0xd0a   :  { %3810 = vmatprep.subr.msk.mxu0 %vm236_vm5, %v2824_v11  ;;  %3817 = vmatprep.subr.msk.mxu1 %vm236_vm5, %v2917_v23 }
 0xd0b   :  { %3811 = vmatpush3.msk.msra.mxu0 %vm236_vm5, %v2824_v11  ;;  %3818 = vmatpush3.msk.msra.mxu1 %vm236_vm5, %v2917_v23 }
 0xd0c   :  { %3812 = vmatprep.subr.mxu0 %v2823_v14  ;;  %3819 = vmatprep.subr.mxu1 %v2916_v15 }
 0xd0d   :  { %3813 = vmatpush3.msra.mxu0 %v2823_v14  ;;  %3820 = vmatpush3.msra.mxu1 %v2916_v15 }
 0xd0e   :  { %3824 = vmatprep.subr.mxu0 %v3012_v24  ;;  %3839 = vmatprep.subr.msk.mxu1 %vm236_vm5, %v3105_v45 }
 0xdc9   :  { %v3804_v25 = vpop.f32.mrf.mxu0  ;;  %v3809_v26 = vpop.f32.mrf.mxu1 }
 0xdca   :  { %v3101_v27 = vsub.f32 %v3804_v25, %v3809_v26 }
 0xdcb   :  { %v2738_v28 = vpop.f32.mrf.mxu0  ;;  %v2813_v62 = vpop.f32.mrf.mxu1 }
 0xdcc   :  { %3814 = vmatprep.mubr.msk.f32.mxu0 %vm2825_vm14, %v2738_v28  ;;  %3821 = vmatprep.mubr.msk.f32.mxu1 %vm2825_vm14, %v2813_v62  ;;  %v3100_v51 = vsub.f32 %v2738_v28, %v2813_v62 }
 0xdcd   :  { %3815 = vmatmul.mubr.msk.f32.vlgmr.msra.gmra.mxu0 %vm2825_vm14, %v3804_v25  ;;  %3822 = vmatmul.mubr.msk.f32.vlgmr.msra.gmra.mxu1 %vm2825_vm14, %v3809_v26 }
 0xdce   :  { %3825 = vmatpush3.msra.mxu0 %v3012_v24  ;;  %3840 = vmatpush3.msk.msra.mxu1 %vm236_vm5, %v3105_v45 }
 0xdcf   :  { %3826 = vmatprep.subr.mxu0 %v3011_v29  ;;  %3841 = vmatprep.subr.mxu1 %v3104_v46 }
 0xdd0   :  { %3827 = vmatpush3.msra.mxu0 %v3011_v29  ;;  %3842 = vmatpush3.msra.mxu1 %v3104_v46 }
 0xdd1   :  { %3828 = vmatprep.subr.mxu0 %v3010_v30  ;;  %3846 = vmatprep.subr.mxu1 %v3869_v9 }
 0xdd2   :  { %3829 = vmatpush3.msra.mxu0 %v3010_v30 }
 0xdd3   :  { %3830 = vmatprep.subr.mxu0 %v3009_v31 }
 0xdd4   :  { %3831 = vmatpush3.msra.mxu0 %v3009_v31 }
 0xdd5   :  { %3832 = vmatprep.subr.mxu0 %v3008_v32 }
 0xdd6   :  { %3833 = vmatpush3.msra.mxu0 %v3008_v32 }
 0xdd7   :  { %3834 = vmatprep.subr.mxu0 %v3007_v33 }
 0xdd8   :  { %3835 = vmatpush3.msra.mxu0 %v3007_v33 }
 0xe8d   :  { %v3816_v35 = vpop.f32.mrf.mxu0  ;;  %v3823_v36 = vpop.f32.mrf.mxu1 }
 0xe8e   :  { %v2915_v37 = vadd.f32 %v3816_v35, %v3443_v34 }
 0xe8f   :  { %v2901_v38 = vpop.f32.mrf.mxu0  ;;  %v2993_v41 = vpop.f32.mrf.mxu1 }
 0xe90   :  { %v2914_v39 = vadd.f32 %v3443_v34, %v2901_v38  ;;  %v3003_v40 = vadd.f32 %v3823_v36, %v2915_v37 }
 0xe92   :  { %v3002_v42 = vadd.f32 %v2993_v41, %v2914_v39  ;;  %v3005_v44 = vmax.f32 %v3003_v40, 0.0 }
 0xe94   :  { %v3004_v43 = vmax.f32 %v3002_v42, 0.0 }
 0xe96   :  { %3836 = vmatprep.mubr.msk.f32.mxu0 %vm3018_vm15, %v3004_v43 }
 0xe97   :  { %3837 = vmatmul.mubr.msk.f32.vlgmr.msra.gmra.mxu0 %vm3018_vm15, %v3005_v44 }
 0xf57   :  { %v3838_v48 = vpop.f32.mrf.mxu0 }
 0xf58   :  { %v3097_v49 = vadd.f32 %v3838_v48, %v3447_v47 }
 0xf59   :  { %v3091_v50 = vpop.f32.mrf.mxu0 }
 0xf5a   :  { %v3092_v52 = vadd.f32 %v3447_v47, %v3091_v50  ;;  %v3103_v56 = vmul.f32 %v3101_v27, %v3097_v49 }
 0xf5c   :  { %v3102_v55 = vmul.f32 %v3100_v51, %v3092_v52 }
 0xf5e   :  { %3843 = vmatprep.mubr.msk.f32.mxu1 %vm2825_vm14, %v3102_v55 }
 0xf5f   :  { %3844 = vmatmul.mubr.msk.f32.vlgmr.msra.gmra.mxu1 %vm2825_vm14, %v3103_v56 }
 0xf60   :  { %3850 = vmatprep.mubr.msk.f32.mxu1 %vm3870_vm8, %v3869_v9 }
0x101f   :  { %v3845_v58 = vpop.f32.mrf.mxu1 }
0x1020   :  { %v3195_v59 = vadd.f32 %v3845_v58, %v3453_v57 }
0x1021   :  { %v3181_v60 = vpop.f32.mrf.mxu1 }
0x1022   :  { %v3194_v61 = vadd.f32 %v3453_v57, %v3181_v60  ;;  %3847 = vmatpush3.msra.mxu1 %v3195_v59 }
0x1023   :  { %3848 = vmatprep.subr.mxu1 %v3869_v9 }
0x1024   :  { %3849 = vmatpush3.msra.mxu1 %v3194_v61 }
0x1025   :  { %3851 = vmatmul.mubr.msk.f32.vlgmr.msra.gmra.mxu1 %vm418_vm7, %v4009_v53  ;;  %3853 = vmatprep.subr.mxu1 %v3869_v9  ;;  %v3454_v53 = vld [vmem:[%s4397_s7 + $0x88] ss:$0 sm:$0xff] }
0x1026   :  { %3854 = vmatpush3.msk.msra.mxu1 %vm236_vm5, %v3272_v10  ;;  %3857 = vmatprep.mubr.msk.f32.mxu1 %vm3870_vm8, %v3869_v9 }
0x1027   :  { %3855 = vmatprep.subr.mxu1 %v3869_v9 }
0x1028   :  { %3856 = vmatpush3.msra.mxu1 %v3271_v63 }
0x1029   :  { %3858 = vmatmul.mubr.msk.f32.vlgmr.msra.gmra.mxu1 %vm2825_vm14, %v4298_v22 }
0x10e5   :  { %v3267_v54 = vpop.f32.mrf.mxu1 }
0x10e6   :  { %v3268_v1 = vadd.f32 %v3454_v53, %v3267_v54 }
0x10e7   :  { %v3852_v0 = vpop.f32.mrf.mxu1 }
0x10e9   :  { %v3345_v2 = vpop.f32.mrf.mxu1 }
0x10ea   :  { %v3349_v3 = vadd.f32 %v3345_v2, %v3268_v1 }
0x10eb   :  { %v3859_v4 = vpop.f32.mrf.mxu1 }
0x10ec   :  { %3350 = vst [vmem:[%s4398_s8] sm:$0xff] %v3349_v3 }

</bundles_post_ra>
